<compile_context>
chip_gen: v7x
topology: tpu7x:2x2x1
jax: 0.10.0
libtpu: 0.0.40
codegen_flags: <defaults>
</compile_context>

<pallas_src>
import functools

import jax
import jax.numpy as jnp
from jax.experimental import pallas as pl
from jax.experimental.pallas import tpu as pltpu


# ---------------------------------------------------------------------------
# Model configuration (small, CLIP-text-like)
# ---------------------------------------------------------------------------
BATCH = 2
SEQ = 8          # max_length (77 in real CLIP-L; small here)
HIDDEN = 64      # 768 in CLIP-L
HEADS = 4        # 12 in CLIP-L
HEAD_DIM = HIDDEN // HEADS
MLP = 4 * HIDDEN
LAYERS = 2       # 12 in CLIP-L
VOCAB = 1000
LN_EPS = 1e-5
NEG_BIAS = -1e30


def _layernorm(x, g, b, eps=LN_EPS):
    mu = jnp.mean(x, axis=-1, keepdims=True)
    var = jnp.mean(jnp.square(x - mu), axis=-1, keepdims=True)
    return (x - mu) * jax.lax.rsqrt(var + eps) * g + b


# ---------------------------------------------------------------------------
# Pallas kernel: whole CLIP text encoder (all layers + final LN) for one
# batch element per grid "row".  One layer-grid step == one encoder layer;
# the residual stream is resident in VMEM scratch.
# ---------------------------------------------------------------------------
def clip_text_kernel(x_ref, fg_ref, fb_ref,
                     ln1g_ref, ln1b_ref, wqkv_ref, bqkv_ref,
                     wo_ref, bo_ref, ln2g_ref, ln2b_ref,
                     w1_ref, b1_ref, w2_ref, b2_ref,
                     o_ref, resid_ref, ctx_ref,
                     *, heads, head_dim, hidden, seq):
    layer = pl.program_id(1)

    # load the embeddings into the resident f32 residual stream on layer 0
    @pl.when(layer == 0)
    def _():
        resid_ref[...] = x_ref[...].astype(jnp.float32)

    x = resid_ref[...]                               # (S, D) f32

    # (S, S) causal mask generated in-kernel -- replaces the former
    # O((B*S)^2) HBM bias input (batch separation now comes from the grid).
    row = jax.lax.broadcasted_iota(jnp.int32, (seq, seq), 0)
    col = jax.lax.broadcasted_iota(jnp.int32, (seq, seq), 1)
    bias = jnp.where(col <= row, 0.0, NEG_BIAS)      # f32

    # ---- self-attention sub-block (pre-LN) --------------------------------
    h = _layernorm(x, ln1g_ref[0], ln1b_ref[0]).astype(jnp.bfloat16)
    qkv = (jnp.dot(h, wqkv_ref[0], preferred_element_type=jnp.float32)
           + bqkv_ref[0])                            # (S, 3D) f32 accumulation

    # one-time bf16 casts (no per-head casts); K transposed once per layer
    q = qkv[:, :hidden].astype(jnp.bfloat16)                 # (S, D)
    kt = qkv[:, hidden:2 * hidden].astype(jnp.bfloat16).T    # (D, S)
    v = qkv[:, 2 * hidden:].astype(jnp.bfloat16)             # (S, D)

    # static head loop: head_dim < 128 lanes, so slices must be static for a
    # clean Mosaic lowering; ctx goes straight to scratch -> no carried f32
    # accumulator / bounded live ranges.
    for hh in range(heads):
        sl = slice(hh * head_dim, (hh + 1) * head_dim)
        s = jnp.dot(q[:, sl], kt[sl, :],
                    preferred_element_type=jnp.float32) + bias      # (S, S)
        m = jnp.max(s, axis=-1, keepdims=True)
        e = jnp.exp(s - m)
        p = e * pl.reciprocal(jnp.sum(e, axis=-1, keepdims=True), approx=True)
        ctx_ref[:, sl] = jnp.dot(p.astype(jnp.bfloat16), v[:, sl],
                                 preferred_element_type=jnp.float32
                                 ).astype(jnp.bfloat16)

    # single K=D output projection (amortizes MXU push/drain over all heads)
    attn = jnp.dot(ctx_ref[...], wo_ref[0], preferred_element_type=jnp.float32)
    x = x + attn + bo_ref[0]

    # ---- MLP sub-block (pre-LN, quick_gelu) --------------------------------
    h = _layernorm(x, ln2g_ref[0], ln2b_ref[0]).astype(jnp.bfloat16)
    h1 = (jnp.dot(h, w1_ref[0], preferred_element_type=jnp.float32)
          + b1_ref[0])
    h1 = h1 * jax.nn.sigmoid(1.702 * h1)             # quick_gelu (f32)
    h2 = (jnp.dot(h1.astype(jnp.bfloat16), w2_ref[0],
                  preferred_element_type=jnp.float32) + b2_ref[0])
    x = x + h2

    resid_ref[...] = x

    # final LayerNorm fused into the last layer iteration
    @pl.when(layer == pl.num_programs(1) - 1)
    def _():
        o_ref[...] = _layernorm(x, fg_ref[...], fb_ref[...]).astype(o_ref.dtype)


def clip_text_transformer(x, params):
    """x: (B, S, D) float32 embeddings -> (B, S, D) float32 last_hidden_state."""
    B, S, D = x.shape
    x2 = x.reshape(B * S, D)

    stacked = params['stacked']
    layer_names = ['ln1_g', 'ln1_b', 'wqkv', 'bqkv', 'wo', 'bo',
                   'ln2_g', 'ln2_b', 'w1', 'b1', 'w2', 'b2']
    layer_ws = [stacked[n] for n in layer_names]
    num_layers = stacked['wqkv'].shape[0]

    def layer_spec(w):
        blk = (1,) + w.shape[1:]
        nd = w.ndim
        return pl.BlockSpec(blk, lambda b, l, _nd=nd: (l,) + (0,) * (_nd - 1))

    def const_spec(w):
        nd = w.ndim
        return pl.BlockSpec(w.shape, lambda b, l, _nd=nd: (0,) * _nd)

    in_specs = [pl.BlockSpec((S, D), lambda b, l: (b, 0)),   # per-batch rows
                const_spec(params['final_ln_g']),
                const_spec(params['final_ln_b'])]
    in_specs += [layer_spec(w) for w in layer_ws]

    kernel = functools.partial(clip_text_kernel, heads=HEADS,
                               head_dim=HEAD_DIM, hidden=D, seq=S)

    out = pl.pallas_call(
        kernel,
        out_shape=jax.ShapeDtypeStruct((B * S, D), jnp.float32),
        grid_spec=pltpu.PrefetchScalarGridSpec(
            num_scalar_prefetch=0,
            grid=(B, num_layers),
            in_specs=in_specs,
            out_specs=pl.BlockSpec((S, D), lambda b, l: (b, 0)),
            scratch_shapes=[pltpu.VMEM((S, D), jnp.float32),     # residual
                            pltpu.VMEM((S, D), jnp.bfloat16)]),  # ctx (heads)
        compiler_params=pltpu.CompilerParams(
            dimension_semantics=("parallel", "arbitrary"),
            vmem_limit_bytes=48 * 1024 * 1024),
    )(x2, params['final_ln_g'], params['final_ln_b'], *layer_ws)

    return out.reshape(B, S, D)


# ---------------------------------------------------------------------------
# Deterministic parameter construction (weights bf16, biases/LN params f32,
# q-scale folded into wq AND bq, wq/wk/wv fused into wqkv, layers stacked).
# ---------------------------------------------------------------------------
def init_params(key):
    keys = jax.random.split(key, 2 + LAYERS)
    tok_emb = 0.02 * jax.random.normal(keys[0], (VOCAB, HIDDEN), jnp.float32)
    pos_emb = 0.02 * jax.random.normal(keys[1], (SEQ, HIDDEN), jnp.float32)

    q_scale = HEAD_DIM ** -0.5
    wqkv_l, bqkv_l, wo_l, w1_l, w2_l = [], [], [], [], []
    for li in range(LAYERS):
        lk = jax.random.split(keys[2 + li], 6)
        wq = 0.02 * jax.random.normal(lk[0], (HIDDEN, HIDDEN), jnp.float32) * q_scale
        wk = 0.02 * jax.random.normal(lk[1], (HIDDEN, HIDDEN), jnp.float32)
        wv = 0.02 * jax.random.normal(lk[2], (HIDDEN, HIDDEN), jnp.float32)
        wqkv_l.append(jnp.concatenate([wq, wk, wv], axis=1))
        # q bias must also carry the q_scale fold (zeros here, but correct
        # when loading a real checkpoint).
        bq = jnp.zeros((HIDDEN,), jnp.float32) * q_scale
        bk = jnp.zeros((HIDDEN,), jnp.float32)
        bv = jnp.zeros((HIDDEN,), jnp.float32)
        bqkv_l.append(jnp.concatenate([bq, bk, bv])[None, :])
        wo_l.append(0.02 * jax.random.normal(lk[3], (HIDDEN, HIDDEN), jnp.float32))
        w1_l.append(0.02 * jax.random.normal(lk[4], (HIDDEN, MLP), jnp.float32))
        w2_l.append(0.02 * jax.random.normal(lk[5], (MLP, HIDDEN), jnp.float32))

    stacked = {
        'ln1_g': jnp.ones((LAYERS, 1, HIDDEN), jnp.float32),
        'ln1_b': jnp.zeros((LAYERS, 1, HIDDEN), jnp.float32),
        'wqkv': jnp.stack(wqkv_l).astype(jnp.bfloat16),
        'bqkv': jnp.stack(bqkv_l),
        'wo': jnp.stack(wo_l).astype(jnp.bfloat16),
        'bo': jnp.zeros((LAYERS, 1, HIDDEN), jnp.float32),
        'ln2_g': jnp.ones((LAYERS, 1, HIDDEN), jnp.float32),
        'ln2_b': jnp.zeros((LAYERS, 1, HIDDEN), jnp.float32),
        'w1': jnp.stack(w1_l).astype(jnp.bfloat16),
        'b1': jnp.zeros((LAYERS, 1, MLP), jnp.float32),
        'w2': jnp.stack(w2_l).astype(jnp.bfloat16),
        'b2': jnp.zeros((LAYERS, 1, HIDDEN), jnp.float32),
    }
    return {
        'tok_emb': tok_emb,
        'pos_emb': pos_emb,
        'final_ln_g': jnp.ones((1, HIDDEN), jnp.float32),
        'final_ln_b': jnp.zeros((1, HIDDEN), jnp.float32),
        'stacked': stacked,
    }


# ---------------------------------------------------------------------------
# FrozenCLIPEmbedder.forward equivalent (layer='last')
# ---------------------------------------------------------------------------
def frozen_clip_embedder_forward(token_ids, params):
    """token_ids: (B, SEQ) int32 -> z: (B, SEQ, HIDDEN) float32 last_hidden_state."""
    # TODO(synk): CLIPTokenizer (BPE) has no Pallas equivalent; token ids are inputs.
    # glue: embedding gather (token + learned position embeddings)
    x = (params['tok_emb'][token_ids] + params['pos_emb'][None, :, :]).astype(jnp.float32)
    return clip_text_transformer(x, params)


if __name__ == "__main__":
    key = jax.random.PRNGKey(0)
    pkey, tkey = jax.random.split(key)

    params = init_params(pkey)

    # deterministic "tokenized text": BOS=1, EOS=2, pad=0, random content ids
    content = jax.random.randint(tkey, (BATCH, SEQ), 3, VOCAB, dtype=jnp.int32)
    token_ids = content.at[:, 0].set(1).at[:, -1].set(2)

    z = frozen_clip_embedder_forward(token_ids, params)
    z = jax.block_until_ready(z)

    assert z.shape == (BATCH, SEQ, HIDDEN)
    assert z.dtype == jnp.float32
    assert bool(jnp.all(jnp.isfinite(z)))
    print("KERNEL_OK")
</pallas_src>

<mosaic_0001>
module attributes {stable_mosaic.version = 11 : i64} {
  func.func @clip_text_kernel(%arg0: i32, %arg1: i32, %arg2: memref<8x64xf32, #tpu.memory_space<vmem>>, %arg3: memref<1x64xf32, #tpu.memory_space<vmem>>, %arg4: memref<1x64xf32, #tpu.memory_space<vmem>>, %arg5: memref<1x1x64xf32, #tpu.memory_space<vmem>>, %arg6: memref<1x1x64xf32, #tpu.memory_space<vmem>>, %arg7: memref<1x64x192xbf16, #tpu.memory_space<vmem>>, %arg8: memref<1x1x192xf32, #tpu.memory_space<vmem>>, %arg9: memref<1x64x64xbf16, #tpu.memory_space<vmem>>, %arg10: memref<1x1x64xf32, #tpu.memory_space<vmem>>, %arg11: memref<1x1x64xf32, #tpu.memory_space<vmem>>, %arg12: memref<1x1x64xf32, #tpu.memory_space<vmem>>, %arg13: memref<1x64x256xbf16, #tpu.memory_space<vmem>>, %arg14: memref<1x1x256xf32, #tpu.memory_space<vmem>>, %arg15: memref<1x256x64xbf16, #tpu.memory_space<vmem>>, %arg16: memref<1x1x64xf32, #tpu.memory_space<vmem>>, %arg17: memref<8x64xf32, #tpu.memory_space<vmem>>, %arg18: memref<8x64xf32, #tpu.memory_space<vmem>>, %arg19: memref<8x64xbf16, #tpu.memory_space<vmem>>) attributes {dimension_semantics = [#tpu.dimension_semantics<parallel>, #tpu.dimension_semantics<arbitrary>], iteration_bounds = array<i64: 2, 2>, scalar_prefetch = 0 : i64, scratch_operands = 2 : i64, tpu.core_type = #tpu.core_type<tc>, window_params = [{transform_indices = @transform_0, window_bounds = array<i64: 8, 64>}, {pipeline_mode = #tpu.pipeline_mode<synchronous>, transform_indices = @transform_1, window_bounds = array<i64: 1, 64>}, {pipeline_mode = #tpu.pipeline_mode<synchronous>, transform_indices = @transform_2, window_bounds = array<i64: 1, 64>}, {transform_indices = @transform_3, window_bounds = array<i64: 1, 1, 64>}, {transform_indices = @transform_4, window_bounds = array<i64: 1, 1, 64>}, {transform_indices = @transform_5, window_bounds = array<i64: 1, 64, 192>}, {transform_indices = @transform_6, window_bounds = array<i64: 1, 1, 192>}, {transform_indices = @transform_7, window_bounds = array<i64: 1, 64, 64>}, {transform_indices = @transform_8, window_bounds = array<i64: 1, 1, 64>}, {transform_indices = @transform_9, window_bounds = array<i64: 1, 1, 64>}, {transform_indices = @transform_10, window_bounds = array<i64: 1, 1, 64>}, {transform_indices = @transform_11, window_bounds = array<i64: 1, 64, 256>}, {transform_indices = @transform_12, window_bounds = array<i64: 1, 1, 256>}, {transform_indices = @transform_13, window_bounds = array<i64: 1, 256, 64>}, {transform_indices = @transform_14, window_bounds = array<i64: 1, 1, 64>}, {transform_indices = @transform_15, window_bounds = array<i64: 8, 64>}]} {
    %c0_i32 = arith.constant 0 : i32
    %0 = arith.cmpi eq, %arg1, %c0_i32 : i32
    %1 = arith.extui %0 : i1 to i32
    %c0_i32_0 = arith.constant 0 : i32
    %2 = arith.cmpi ne, %1, %c0_i32_0 : i32
    scf.if %2 {
      %c0_81 = arith.constant 0 : index
      %c0_82 = arith.constant 0 : index
      %191 = vector.load %arg2[%c0_81, %c0_82] : memref<8x64xf32, #tpu.memory_space<vmem>>, vector<8x64xf32>
      %c0_83 = arith.constant 0 : index
      %c0_84 = arith.constant 0 : index
      %192 = vector.load %arg18[%c0_83, %c0_84] : memref<8x64xf32, #tpu.memory_space<vmem>>, vector<8x64xf32>
      tpu.vector_store %arg18[%c0_83, %c0_84], %191 {strides = array<i32>} : memref<8x64xf32, #tpu.memory_space<vmem>>, vector<8x64xf32>,
    } else {
    }
    %c0 = arith.constant 0 : index
    %c0_1 = arith.constant 0 : index
    %3 = vector.load %arg18[%c0, %c0_1] : memref<8x64xf32, #tpu.memory_space<vmem>>, vector<8x64xf32>
    %4 = tpu.iota {dimensions = array<i32: 0>} : vector<8x8xi32>
    %5 = tpu.iota {dimensions = array<i32: 1>} : vector<8x8xi32>
    %6 = arith.cmpi sle, %5, %4 : vector<8x8xi32>
    %cst = arith.constant 0.000000e+00 : f32
    %cst_2 = arith.constant -1.000000e+30 : f32
    %7 = vector.broadcast %cst : f32 to vector<8x8xf32>
    %8 = vector.broadcast %cst_2 : f32 to vector<8x8xf32>
    %9 = arith.select %6, %7, %8 : vector<8x8xi1>, vector<8x8xf32>
    %c0_3 = arith.constant 0 : index
    %c0_4 = arith.constant 0 : index
    %c0_5 = arith.constant 0 : index
    %10 = vector.load %arg5[%c0_3, %c0_4, %c0_5] : memref<1x1x64xf32, #tpu.memory_space<vmem>>, vector<1x1x64xf32>
    %11 = vector.shape_cast %10 : vector<1x1x64xf32> to vector<1x64xf32>
    %c0_6 = arith.constant 0 : index
    %c0_7 = arith.constant 0 : index
    %c0_8 = arith.constant 0 : index
    %12 = vector.load %arg6[%c0_6, %c0_7, %c0_8] : memref<1x1x64xf32, #tpu.memory_space<vmem>>, vector<1x1x64xf32>
    %13 = vector.shape_cast %12 : vector<1x1x64xf32> to vector<1x64xf32>
    %cst_9 = arith.constant dense<0.000000e+00> : vector<8xf32>
    %14 = vector.multi_reduction <add>, %3, %cst_9 [1] : vector<8x64xf32> to vector<8xf32>
    %15 = vector.shape_cast %14 : vector<8xf32> to vector<8x1xf32>
    %cst_10 = arith.constant 6.400000e+01 : f32
    %16 = vector.broadcast %cst_10 : f32 to vector<8x1xf32>
    %17 = arith.divf %15, %16 : vector<8x1xf32>
    %18 = vector.broadcast %17 : vector<8x1xf32> to vector<8x64xf32>
    %19 = arith.subf %3, %18 : vector<8x64xf32>
    %20 = arith.mulf %19, %19 : vector<8x64xf32>
    %cst_11 = arith.constant dense<0.000000e+00> : vector<8xf32>
    %21 = vector.multi_reduction <add>, %20, %cst_11 [1] : vector<8x64xf32> to vector<8xf32>
    %22 = vector.shape_cast %21 : vector<8xf32> to vector<8x1xf32>
    %cst_12 = arith.constant 6.400000e+01 : f32
    %23 = vector.broadcast %cst_12 : f32 to vector<8x1xf32>
    %24 = arith.divf %22, %23 : vector<8x1xf32>
    %25 = vector.broadcast %17 : vector<8x1xf32> to vector<8x64xf32>
    %26 = arith.subf %3, %25 : vector<8x64xf32>
    %cst_13 = arith.constant 9.99999974E-6 : f32
    %27 = vector.broadcast %cst_13 : f32 to vector<8x1xf32>
    %28 = arith.addf %24, %27 : vector<8x1xf32>
    %29 = math.rsqrt %28 : vector<8x1xf32>
    %30 = vector.broadcast %29 : vector<8x1xf32> to vector<8x64xf32>
    %31 = arith.mulf %26, %30 : vector<8x64xf32>
    %32 = vector.broadcast %11 : vector<1x64xf32> to vector<8x64xf32>
    %33 = arith.mulf %31, %32 : vector<8x64xf32>
    %34 = vector.broadcast %13 : vector<1x64xf32> to vector<8x64xf32>
    %35 = arith.addf %33, %34 : vector<8x64xf32>
    %36 = arith.truncf %35 : vector<8x64xf32> to vector<8x64xbf16>
    %c0_14 = arith.constant 0 : index
    %c0_15 = arith.constant 0 : index
    %c0_16 = arith.constant 0 : index
    %37 = vector.load %arg7[%c0_14, %c0_15, %c0_16] : memref<1x64x192xbf16, #tpu.memory_space<vmem>>, vector<1x64x192xbf16>
    %38 = vector.shape_cast %37 : vector<1x64x192xbf16> to vector<64x192xbf16>
    %cst_17 = arith.constant dense<0.000000e+00> : vector<8x192xf32>
    %39 = tpu.matmul %36, %38, %cst_17 {dimension_numbers = #tpu.dot_dimension_numbers<[1], [0], [0], [1], [0, 0, 1, 1], [], []>} : vector<8x64xbf16>, vector<64x192xbf16>, vector<8x192xf32> -> vector<8x192xf32>
    %c0_18 = arith.constant 0 : index
    %c0_19 = arith.constant 0 : index
    %c0_20 = arith.constant 0 : index
    %40 = vector.load %arg8[%c0_18, %c0_19, %c0_20] : memref<1x1x192xf32, #tpu.memory_space<vmem>>, vector<1x1x192xf32>
    %41 = vector.shape_cast %40 : vector<1x1x192xf32> to vector<1x192xf32>
    %42 = vector.broadcast %41 : vector<1x192xf32> to vector<8x192xf32>
    %43 = arith.addf %39, %42 : vector<8x192xf32>
    %44 = vector.extract_strided_slice %43 {offsets = [0, 0], sizes = [8, 64], strides = [1, 1]} : vector<8x192xf32> to vector<8x64xf32>
    %45 = arith.truncf %44 : vector<8x64xf32> to vector<8x64xbf16>
    %46 = vector.extract_strided_slice %43 {offsets = [0, 64], sizes = [8, 64], strides = [1, 1]} : vector<8x192xf32> to vector<8x64xf32>
    %47 = arith.truncf %46 : vector<8x64xf32> to vector<8x64xbf16>
    %48 = tpu.transpose %47, [1, 0] : vector<8x64xbf16> -> vector<64x8xbf16>
    %49 = vector.extract_strided_slice %43 {offsets = [0, 128], sizes = [8, 64], strides = [1, 1]} : vector<8x192xf32> to vector<8x64xf32>
    %50 = arith.truncf %49 : vector<8x64xf32> to vector<8x64xbf16>
    %51 = vector.extract_strided_slice %45 {offsets = [0, 0], sizes = [8, 16], strides = [1, 1]} : vector<8x64xbf16> to vector<8x16xbf16>
    %52 = vector.extract_strided_slice %48 {offsets = [0, 0], sizes = [16, 8], strides = [1, 1]} : vector<64x8xbf16> to vector<16x8xbf16>
    %cst_21 = arith.constant dense<0.000000e+00> : vector<8x8xf32>
    %53 = tpu.matmul %51, %52, %cst_21 {dimension_numbers = #tpu.dot_dimension_numbers<[1], [0], [0], [1], [0, 0, 1, 1], [], []>} : vector<8x16xbf16>, vector<16x8xbf16>, vector<8x8xf32> -> vector<8x8xf32>
    %54 = arith.addf %53, %9 : vector<8x8xf32>
    %cst_22 = arith.constant dense<0xFF800000> : vector<8xf32>
    %55 = vector.multi_reduction <maximumf>, %54, %cst_22 [1] : vector<8x8xf32> to vector<8xf32>
    %56 = vector.shape_cast %55 : vector<8xf32> to vector<8x1xf32>
    %57 = vector.broadcast %56 : vector<8x1xf32> to vector<8x8xf32>
    %58 = arith.subf %54, %57 : vector<8x8xf32>
    %59 = math.exp %58 : vector<8x8xf32>
    %cst_23 = arith.constant dense<0.000000e+00> : vector<8xf32>
    %60 = vector.multi_reduction <add>, %59, %cst_23 [1] : vector<8x8xf32> to vector<8xf32>
    %61 = vector.shape_cast %60 : vector<8xf32> to vector<8x1xf32>
    %62 = tpu.reciprocal %61 {approx = true} : vector<8x1xf32> -> vector<8x1xf32>
    %63 = vector.broadcast %62 : vector<8x1xf32> to vector<8x8xf32>
    %64 = arith.mulf %59, %63 : vector<8x8xf32>
    %65 = arith.truncf %64 : vector<8x8xf32> to vector<8x8xbf16>
    %66 = vector.extract_strided_slice %50 {offsets = [0, 0], sizes = [8, 16], strides = [1, 1]} : vector<8x64xbf16> to vector<8x16xbf16>
    %cst_24 = arith.constant dense<0.000000e+00> : vector<8x16xf32>
    %67 = tpu.matmul %65, %66, %cst_24 {dimension_numbers = #tpu.dot_dimension_numbers<[1], [0], [0], [1], [0, 0, 1, 1], [], []>} : vector<8x8xbf16>, vector<8x16xbf16>, vector<8x16xf32> -> vector<8x16xf32>
    %68 = arith.truncf %67 : vector<8x16xf32> to vector<8x16xbf16>
    %c0_25 = arith.constant 0 : index
    %c0_26 = arith.constant 0 : index
    %69 = vector.load %arg19[%c0_25, %c0_26] : memref<8x64xbf16, #tpu.memory_space<vmem>>, vector<8x16xbf16>
    tpu.vector_store %arg19[%c0_25, %c0_26], %68 {strides = array<i32>} : memref<8x64xbf16, #tpu.memory_space<vmem>>, vector<8x16xbf16>,
    %70 = vector.extract_strided_slice %45 {offsets = [0, 16], sizes = [8, 16], strides = [1, 1]} : vector<8x64xbf16> to vector<8x16xbf16>
    %71 = vector.extract_strided_slice %48 {offsets = [16, 0], sizes = [16, 8], strides = [1, 1]} : vector<64x8xbf16> to vector<16x8xbf16>
    %cst_27 = arith.constant dense<0.000000e+00> : vector<8x8xf32>
    %72 = tpu.matmul %70, %71, %cst_27 {dimension_numbers = #tpu.dot_dimension_numbers<[1], [0], [0], [1], [0, 0, 1, 1], [], []>} : vector<8x16xbf16>, vector<16x8xbf16>, vector<8x8xf32> -> vector<8x8xf32>
    %73 = arith.addf %72, %9 : vector<8x8xf32>
    %cst_28 = arith.constant dense<0xFF800000> : vector<8xf32>
    %74 = vector.multi_reduction <maximumf>, %73, %cst_28 [1] : vector<8x8xf32> to vector<8xf32>
    %75 = vector.shape_cast %74 : vector<8xf32> to vector<8x1xf32>
    %76 = vector.broadcast %75 : vector<8x1xf32> to vector<8x8xf32>
    %77 = arith.subf %73, %76 : vector<8x8xf32>
    %78 = math.exp %77 : vector<8x8xf32>
    %cst_29 = arith.constant dense<0.000000e+00> : vector<8xf32>
    %79 = vector.multi_reduction <add>, %78, %cst_29 [1] : vector<8x8xf32> to vector<8xf32>
    %80 = vector.shape_cast %79 : vector<8xf32> to vector<8x1xf32>
    %81 = tpu.reciprocal %80 {approx = true} : vector<8x1xf32> -> vector<8x1xf32>
    %82 = vector.broadcast %81 : vector<8x1xf32> to vector<8x8xf32>
    %83 = arith.mulf %78, %82 : vector<8x8xf32>
    %84 = arith.truncf %83 : vector<8x8xf32> to vector<8x8xbf16>
    %85 = vector.extract_strided_slice %50 {offsets = [0, 16], sizes = [8, 16], strides = [1, 1]} : vector<8x64xbf16> to vector<8x16xbf16>
    %cst_30 = arith.constant dense<0.000000e+00> : vector<8x16xf32>
    %86 = tpu.matmul %84, %85, %cst_30 {dimension_numbers = #tpu.dot_dimension_numbers<[1], [0], [0], [1], [0, 0, 1, 1], [], []>} : vector<8x8xbf16>, vector<8x16xbf16>, vector<8x16xf32> -> vector<8x16xf32>
    %87 = arith.truncf %86 : vector<8x16xf32> to vector<8x16xbf16>
    %c0_31 = arith.constant 0 : index
    %c16 = arith.constant 16 : index
    %88 = vector.load %arg19[%c0_31, %c16] : memref<8x64xbf16, #tpu.memory_space<vmem>>, vector<8x16xbf16>
    tpu.vector_store %arg19[%c0_31, %c16], %87 {strides = array<i32>} : memref<8x64xbf16, #tpu.memory_space<vmem>>, vector<8x16xbf16>,
    %89 = vector.extract_strided_slice %45 {offsets = [0, 32], sizes = [8, 16], strides = [1, 1]} : vector<8x64xbf16> to vector<8x16xbf16>
    %90 = vector.extract_strided_slice %48 {offsets = [32, 0], sizes = [16, 8], strides = [1, 1]} : vector<64x8xbf16> to vector<16x8xbf16>
    %cst_32 = arith.constant dense<0.000000e+00> : vector<8x8xf32>
    %91 = tpu.matmul %89, %90, %cst_32 {dimension_numbers = #tpu.dot_dimension_numbers<[1], [0], [0], [1], [0, 0, 1, 1], [], []>} : vector<8x16xbf16>, vector<16x8xbf16>, vector<8x8xf32> -> vector<8x8xf32>
    %92 = arith.addf %91, %9 : vector<8x8xf32>
    %cst_33 = arith.constant dense<0xFF800000> : vector<8xf32>
    %93 = vector.multi_reduction <maximumf>, %92, %cst_33 [1] : vector<8x8xf32> to vector<8xf32>
    %94 = vector.shape_cast %93 : vector<8xf32> to vector<8x1xf32>
    %95 = vector.broadcast %94 : vector<8x1xf32> to vector<8x8xf32>
    %96 = arith.subf %92, %95 : vector<8x8xf32>
    %97 = math.exp %96 : vector<8x8xf32>
    %cst_34 = arith.constant dense<0.000000e+00> : vector<8xf32>
    %98 = vector.multi_reduction <add>, %97, %cst_34 [1] : vector<8x8xf32> to vector<8xf32>
    %99 = vector.shape_cast %98 : vector<8xf32> to vector<8x1xf32>
    %100 = tpu.reciprocal %99 {approx = true} : vector<8x1xf32> -> vector<8x1xf32>
    %101 = vector.broadcast %100 : vector<8x1xf32> to vector<8x8xf32>
    %102 = arith.mulf %97, %101 : vector<8x8xf32>
    %103 = arith.truncf %102 : vector<8x8xf32> to vector<8x8xbf16>
    %104 = vector.extract_strided_slice %50 {offsets = [0, 32], sizes = [8, 16], strides = [1, 1]} : vector<8x64xbf16> to vector<8x16xbf16>
    %cst_35 = arith.constant dense<0.000000e+00> : vector<8x16xf32>
    %105 = tpu.matmul %103, %104, %cst_35 {dimension_numbers = #tpu.dot_dimension_numbers<[1], [0], [0], [1], [0, 0, 1, 1], [], []>} : vector<8x8xbf16>, vector<8x16xbf16>, vector<8x16xf32> -> vector<8x16xf32>
    %106 = arith.truncf %105 : vector<8x16xf32> to vector<8x16xbf16>
    %c0_36 = arith.constant 0 : index
    %c32 = arith.constant 32 : index
    %107 = vector.load %arg19[%c0_36, %c32] : memref<8x64xbf16, #tpu.memory_space<vmem>>, vector<8x16xbf16>
    tpu.vector_store %arg19[%c0_36, %c32], %106 {strides = array<i32>} : memref<8x64xbf16, #tpu.memory_space<vmem>>, vector<8x16xbf16>,
    %108 = vector.extract_strided_slice %45 {offsets = [0, 48], sizes = [8, 16], strides = [1, 1]} : vector<8x64xbf16> to vector<8x16xbf16>
    %109 = vector.extract_strided_slice %48 {offsets = [48, 0], sizes = [16, 8], strides = [1, 1]} : vector<64x8xbf16> to vector<16x8xbf16>
    %cst_37 = arith.constant dense<0.000000e+00> : vector<8x8xf32>
    %110 = tpu.matmul %108, %109, %cst_37 {dimension_numbers = #tpu.dot_dimension_numbers<[1], [0], [0], [1], [0, 0, 1, 1], [], []>} : vector<8x16xbf16>, vector<16x8xbf16>, vector<8x8xf32> -> vector<8x8xf32>
    %111 = arith.addf %110, %9 : vector<8x8xf32>
    %cst_38 = arith.constant dense<0xFF800000> : vector<8xf32>
    %112 = vector.multi_reduction <maximumf>, %111, %cst_38 [1] : vector<8x8xf32> to vector<8xf32>
    %113 = vector.shape_cast %112 : vector<8xf32> to vector<8x1xf32>
    %114 = vector.broadcast %113 : vector<8x1xf32> to vector<8x8xf32>
    %115 = arith.subf %111, %114 : vector<8x8xf32>
    %116 = math.exp %115 : vector<8x8xf32>
    %cst_39 = arith.constant dense<0.000000e+00> : vector<8xf32>
    %117 = vector.multi_reduction <add>, %116, %cst_39 [1] : vector<8x8xf32> to vector<8xf32>
    %118 = vector.shape_cast %117 : vector<8xf32> to vector<8x1xf32>
    %119 = tpu.reciprocal %118 {approx = true} : vector<8x1xf32> -> vector<8x1xf32>
    %120 = vector.broadcast %119 : vector<8x1xf32> to vector<8x8xf32>
    %121 = arith.mulf %116, %120 : vector<8x8xf32>
    %122 = arith.truncf %121 : vector<8x8xf32> to vector<8x8xbf16>
    %123 = vector.extract_strided_slice %50 {offsets = [0, 48], sizes = [8, 16], strides = [1, 1]} : vector<8x64xbf16> to vector<8x16xbf16>
    %cst_40 = arith.constant dense<0.000000e+00> : vector<8x16xf32>
    %124 = tpu.matmul %122, %123, %cst_40 {dimension_numbers = #tpu.dot_dimension_numbers<[1], [0], [0], [1], [0, 0, 1, 1], [], []>} : vector<8x8xbf16>, vector<8x16xbf16>, vector<8x16xf32> -> vector<8x16xf32>
    %125 = arith.truncf %124 : vector<8x16xf32> to vector<8x16xbf16>
    %c0_41 = arith.constant 0 : index
    %c48 = arith.constant 48 : index
    %126 = vector.load %arg19[%c0_41, %c48] : memref<8x64xbf16, #tpu.memory_space<vmem>>, vector<8x16xbf16>
    tpu.vector_store %arg19[%c0_41, %c48], %125 {strides = array<i32>} : memref<8x64xbf16, #tpu.memory_space<vmem>>, vector<8x16xbf16>,
    %c0_42 = arith.constant 0 : index
    %c0_43 = arith.constant 0 : index
    %127 = vector.load %arg19[%c0_42, %c0_43] : memref<8x64xbf16, #tpu.memory_space<vmem>>, vector<8x64xbf16>
    %c0_44 = arith.constant 0 : index
    %c0_45 = arith.constant 0 : index
    %c0_46 = arith.constant 0 : index
    %128 = vector.load %arg9[%c0_44, %c0_45, %c0_46] : memref<1x64x64xbf16, #tpu.memory_space<vmem>>, vector<1x64x64xbf16>
    %129 = vector.shape_cast %128 : vector<1x64x64xbf16> to vector<64x64xbf16>
    %cst_47 = arith.constant dense<0.000000e+00> : vector<8x64xf32>
    %130 = tpu.matmul %127, %129, %cst_47 {dimension_numbers = #tpu.dot_dimension_numbers<[1], [0], [0], [1], [0, 0, 1, 1], [], []>} : vector<8x64xbf16>, vector<64x64xbf16>, vector<8x64xf32> -> vector<8x64xf32>
    %131 = arith.addf %3, %130 : vector<8x64xf32>
    %c0_48 = arith.constant 0 : index
    %c0_49 = arith.constant 0 : index
    %c0_50 = arith.constant 0 : index
    %132 = vector.load %arg10[%c0_48, %c0_49, %c0_50] : memref<1x1x64xf32, #tpu.memory_space<vmem>>, vector<1x1x64xf32>
    %133 = vector.shape_cast %132 : vector<1x1x64xf32> to vector<1x64xf32>
    %134 = vector.broadcast %133 : vector<1x64xf32> to vector<8x64xf32>
    %135 = arith.addf %131, %134 : vector<8x64xf32>
    %c0_51 = arith.constant 0 : index
    %c0_52 = arith.constant 0 : index
    %c0_53 = arith.constant 0 : index
    %136 = vector.load %arg11[%c0_51, %c0_52, %c0_53] : memref<1x1x64xf32, #tpu.memory_space<vmem>>, vector<1x1x64xf32>
    %137 = vector.shape_cast %136 : vector<1x1x64xf32> to vector<1x64xf32>
    %c0_54 = arith.constant 0 : index
    %c0_55 = arith.constant 0 : index
    %c0_56 = arith.constant 0 : index
    %138 = vector.load %arg12[%c0_54, %c0_55, %c0_56] : memref<1x1x64xf32, #tpu.memory_space<vmem>>, vector<1x1x64xf32>
    %139 = vector.shape_cast %138 : vector<1x1x64xf32> to vector<1x64xf32>
    %cst_57 = arith.constant dense<0.000000e+00> : vector<8xf32>
    %140 = vector.multi_reduction <add>, %135, %cst_57 [1] : vector<8x64xf32> to vector<8xf32>
    %141 = vector.shape_cast %140 : vector<8xf32> to vector<8x1xf32>
    %cst_58 = arith.constant 6.400000e+01 : f32
    %142 = vector.broadcast %cst_58 : f32 to vector<8x1xf32>
    %143 = arith.divf %141, %142 : vector<8x1xf32>
    %144 = vector.broadcast %143 : vector<8x1xf32> to vector<8x64xf32>
    %145 = arith.subf %135, %144 : vector<8x64xf32>
    %146 = arith.mulf %145, %145 : vector<8x64xf32>
    %cst_59 = arith.constant dense<0.000000e+00> : vector<8xf32>
    %147 = vector.multi_reduction <add>, %146, %cst_59 [1] : vector<8x64xf32> to vector<8xf32>
    %148 = vector.shape_cast %147 : vector<8xf32> to vector<8x1xf32>
    %cst_60 = arith.constant 6.400000e+01 : f32
    %149 = vector.broadcast %cst_60 : f32 to vector<8x1xf32>
    %150 = arith.divf %148, %149 : vector<8x1xf32>
    %151 = vector.broadcast %143 : vector<8x1xf32> to vector<8x64xf32>
    %152 = arith.subf %135, %151 : vector<8x64xf32>
    %cst_61 = arith.constant 9.99999974E-6 : f32
    %153 = vector.broadcast %cst_61 : f32 to vector<8x1xf32>
    %154 = arith.addf %150, %153 : vector<8x1xf32>
    %155 = math.rsqrt %154 : vector<8x1xf32>
    %156 = vector.broadcast %155 : vector<8x1xf32> to vector<8x64xf32>
    %157 = arith.mulf %152, %156 : vector<8x64xf32>
    %158 = vector.broadcast %137 : vector<1x64xf32> to vector<8x64xf32>
    %159 = arith.mulf %157, %158 : vector<8x64xf32>
    %160 = vector.broadcast %139 : vector<1x64xf32> to vector<8x64xf32>
    %161 = arith.addf %159, %160 : vector<8x64xf32>
    %162 = arith.truncf %161 : vector<8x64xf32> to vector<8x64xbf16>
    %c0_62 = arith.constant 0 : index
    %c0_63 = arith.constant 0 : index
    %c0_64 = arith.constant 0 : index
    %163 = vector.load %arg13[%c0_62, %c0_63, %c0_64] : memref<1x64x256xbf16, #tpu.memory_space<vmem>>, vector<1x64x256xbf16>
    %164 = vector.shape_cast %163 : vector<1x64x256xbf16> to vector<64x256xbf16>
    %cst_65 = arith.constant dense<0.000000e+00> : vector<8x256xf32>
    %165 = tpu.matmul %162, %164, %cst_65 {dimension_numbers = #tpu.dot_dimension_numbers<[1], [0], [0], [1], [0, 0, 1, 1], [], []>} : vector<8x64xbf16>, vector<64x256xbf16>, vector<8x256xf32> -> vector<8x256xf32>
    %c0_66 = arith.constant 0 : index
    %c0_67 = arith.constant 0 : index
    %c0_68 = arith.constant 0 : index
    %166 = vector.load %arg14[%c0_66, %c0_67, %c0_68] : memref<1x1x256xf32, #tpu.memory_space<vmem>>, vector<1x1x256xf32>
    %167 = vector.shape_cast %166 : vector<1x1x256xf32> to vector<1x256xf32>
    %168 = vector.broadcast %167 : vector<1x256xf32> to vector<8x256xf32>
    %169 = arith.addf %165, %168 : vector<8x256xf32>
    %cst_69 = arith.constant 1.702000e+00 : f32
    %170 = vector.broadcast %cst_69 : f32 to vector<8x256xf32>
    %171 = arith.mulf %170, %169 : vector<8x256xf32>
    %172 = arith.negf %171 : vector<8x256xf32>
    %173 = math.exp %172 : vector<8x256xf32>
    %cst_70 = arith.constant 1.000000e+00 : f32
    %174 = vector.broadcast %cst_70 : f32 to vector<8x256xf32>
    %175 = arith.addf %174, %173 : vector<8x256xf32>
    %176 = arith.divf %174, %175 : vector<8x256xf32>
    %177 = arith.mulf %169, %176 : vector<8x256xf32>
    %178 = arith.truncf %177 : vector<8x256xf32> to vector<8x256xbf16>
    %c0_71 = arith.constant 0 : index
    %c0_72 = arith.constant 0 : index
    %c0_73 = arith.constant 0 : index
    %179 = vector.load %arg15[%c0_71, %c0_72, %c0_73] : memref<1x256x64xbf16, #tpu.memory_space<vmem>>, vector<1x256x64xbf16>
    %180 = vector.shape_cast %179 : vector<1x256x64xbf16> to vector<256x64xbf16>
    %cst_74 = arith.constant dense<0.000000e+00> : vector<8x64xf32>
    %181 = tpu.matmul %178, %180, %cst_74 {dimension_numbers = #tpu.dot_dimension_numbers<[1], [0], [0], [1], [0, 0, 1, 1], [], []>} : vector<8x256xbf16>, vector<256x64xbf16>, vector<8x64xf32> -> vector<8x64xf32>
    %c0_75 = arith.constant 0 : index
    %c0_76 = arith.constant 0 : index
    %c0_77 = arith.constant 0 : index
    %182 = vector.load %arg16[%c0_75, %c0_76, %c0_77] : memref<1x1x64xf32, #tpu.memory_space<vmem>>, vector<1x1x64xf32>
    %183 = vector.shape_cast %182 : vector<1x1x64xf32> to vector<1x64xf32>
    %184 = vector.broadcast %183 : vector<1x64xf32> to vector<8x64xf32>
    %185 = arith.addf %181, %184 : vector<8x64xf32>
    %186 = arith.addf %135, %185 : vector<8x64xf32>
    %c0_78 = arith.constant 0 : index
    %c0_79 = arith.constant 0 : index
    %187 = vector.load %arg18[%c0_78, %c0_79] : memref<8x64xf32, #tpu.memory_space<vmem>>, vector<8x64xf32>
    tpu.vector_store %arg18[%c0_78, %c0_79], %186 {strides = array<i32>} : memref<8x64xf32, #tpu.memory_space<vmem>>, vector<8x64xf32>,
    %c1_i32 = arith.constant 1 : i32
    %188 = arith.cmpi eq, %arg1, %c1_i32 : i32
    %189 = arith.extui %188 : i1 to i32
    %c0_i32_80 = arith.constant 0 : i32
    %190 = arith.cmpi ne, %189, %c0_i32_80 : i32
    scf.if %190 {
      %c0_81 = arith.constant 0 : index
      %c0_82 = arith.constant 0 : index
      %191 = vector.load %arg3[%c0_81, %c0_82] : memref<1x64xf32, #tpu.memory_space<vmem>>, vector<1x64xf32>
      %c0_83 = arith.constant 0 : index
      %c0_84 = arith.constant 0 : index
      %192 = vector.load %arg4[%c0_83, %c0_84] : memref<1x64xf32, #tpu.memory_space<vmem>>, vector<1x64xf32>
      %cst_85 = arith.constant dense<0.000000e+00> : vector<8xf32>
      %193 = vector.multi_reduction <add>, %186, %cst_85 [1] : vector<8x64xf32> to vector<8xf32>
      %194 = vector.shape_cast %193 : vector<8xf32> to vector<8x1xf32>
      %cst_86 = arith.constant 6.400000e+01 : f32
      %195 = vector.broadcast %cst_86 : f32 to vector<8x1xf32>
      %196 = arith.divf %194, %195 : vector<8x1xf32>
      %197 = vector.broadcast %196 : vector<8x1xf32> to vector<8x64xf32>
      %198 = arith.subf %186, %197 : vector<8x64xf32>
      %199 = arith.mulf %198, %198 : vector<8x64xf32>
      %cst_87 = arith.constant dense<0.000000e+00> : vector<8xf32>
      %200 = vector.multi_reduction <add>, %199, %cst_87 [1] : vector<8x64xf32> to vector<8xf32>
      %201 = vector.shape_cast %200 : vector<8xf32> to vector<8x1xf32>
      %cst_88 = arith.constant 6.400000e+01 : f32
      %202 = vector.broadcast %cst_88 : f32 to vector<8x1xf32>
      %203 = arith.divf %201, %202 : vector<8x1xf32>
      %204 = vector.broadcast %196 : vector<8x1xf32> to vector<8x64xf32>
      %205 = arith.subf %186, %204 : vector<8x64xf32>
      %cst_89 = arith.constant 9.99999974E-6 : f32
      %206 = vector.broadcast %cst_89 : f32 to vector<8x1xf32>
      %207 = arith.addf %203, %206 : vector<8x1xf32>
      %208 = math.rsqrt %207 : vector<8x1xf32>
      %209 = vector.broadcast %208 : vector<8x1xf32> to vector<8x64xf32>
      %210 = arith.mulf %205, %209 : vector<8x64xf32>
      %211 = vector.broadcast %191 : vector<1x64xf32> to vector<8x64xf32>
      %212 = arith.mulf %210, %211 : vector<8x64xf32>
      %213 = vector.broadcast %192 : vector<1x64xf32> to vector<8x64xf32>
      %214 = arith.addf %212, %213 : vector<8x64xf32>
      %c0_90 = arith.constant 0 : index
      %c0_91 = arith.constant 0 : index
      %215 = vector.load %arg17[%c0_90, %c0_91] : memref<8x64xf32, #tpu.memory_space<vmem>>, vector<8x64xf32>
      tpu.vector_store %arg17[%c0_90, %c0_91], %214 {strides = array<i32>} : memref<8x64xf32, #tpu.memory_space<vmem>>, vector<8x64xf32>,
    } else {
    }
    return
  }
  func.func @transform_0(%arg0: i32, %arg1: i32) -> (i32, i32) {
    %c0_i32 = arith.constant 0 : i32
    %c0_i32_0 = arith.constant 0 : i32
    return %arg0, %c0_i32 : i32, i32
  }
  func.func @transform_1(%arg0: i32, %arg1: i32) -> (i32, i32) {
    %c0_i32 = arith.constant 0 : i32
    %c0_i32_0 = arith.constant 0 : i32
    %c0_i32_1 = arith.constant 0 : i32
    return %c0_i32, %c0_i32_0 : i32, i32
  }
  func.func @transform_2(%arg0: i32, %arg1: i32) -> (i32, i32) {
    %c0_i32 = arith.constant 0 : i32
    %c0_i32_0 = arith.constant 0 : i32
    %c0_i32_1 = arith.constant 0 : i32
    return %c0_i32, %c0_i32_0 : i32, i32
  }
  func.func @transform_3(%arg0: i32, %arg1: i32) -> (i32, i32, i32) {
    %c0_i32 = arith.constant 0 : i32
    %c0_i32_0 = arith.constant 0 : i32
    %c0_i32_1 = arith.constant 0 : i32
    return %arg1, %c0_i32, %c0_i32_0 : i32, i32, i32
  }
  func.func @transform_4(%arg0: i32, %arg1: i32) -> (i32, i32, i32) {
    %c0_i32 = arith.constant 0 : i32
    %c0_i32_0 = arith.constant 0 : i32
    %c0_i32_1 = arith.constant 0 : i32
    return %arg1, %c0_i32, %c0_i32_0 : i32, i32, i32
  }
  func.func @transform_5(%arg0: i32, %arg1: i32) -> (i32, i32, i32) {
    %c0_i32 = arith.constant 0 : i32
    %c0_i32_0 = arith.constant 0 : i32
    %c0_i32_1 = arith.constant 0 : i32
    return %arg1, %c0_i32, %c0_i32_0 : i32, i32, i32
  }
  func.func @transform_6(%arg0: i32, %arg1: i32) -> (i32, i32, i32) {
    %c0_i32 = arith.constant 0 : i32
    %c0_i32_0 = arith.constant 0 : i32
    %c0_i32_1 = arith.constant 0 : i32
    return %arg1, %c0_i32, %c0_i32_0 : i32, i32, i32
  }
  func.func @transform_7(%arg0: i32, %arg1: i32) -> (i32, i32, i32) {
    %c0_i32 = arith.constant 0 : i32
    %c0_i32_0 = arith.constant 0 : i32
    %c0_i32_1 = arith.constant 0 : i32
    return %arg1, %c0_i32, %c0_i32_0 : i32, i32, i32
  }
  func.func @transform_8(%arg0: i32, %arg1: i32) -> (i32, i32, i32) {
    %c0_i32 = arith.constant 0 : i32
    %c0_i32_0 = arith.constant 0 : i32
    %c0_i32_1 = arith.constant 0 : i32
    return %arg1, %c0_i32, %c0_i32_0 : i32, i32, i32
  }
  func.func @transform_9(%arg0: i32, %arg1: i32) -> (i32, i32, i32) {
    %c0_i32 = arith.constant 0 : i32
    %c0_i32_0 = arith.constant 0 : i32
    %c0_i32_1 = arith.constant 0 : i32
    return %arg1, %c0_i32, %c0_i32_0 : i32, i32, i32
  }
  func.func @transform_10(%arg0: i32, %arg1: i32) -> (i32, i32, i32) {
    %c0_i32 = arith.constant 0 : i32
    %c0_i32_0 = arith.constant 0 : i32
    %c0_i32_1 = arith.constant 0 : i32
    return %arg1, %c0_i32, %c0_i32_0 : i32, i32, i32
  }
  func.func @transform_11(%arg0: i32, %arg1: i32) -> (i32, i32, i32) {
    %c0_i32 = arith.constant 0 : i32
    %c0_i32_0 = arith.constant 0 : i32
    %c0_i32_1 = arith.constant 0 : i32
    return %arg1, %c0_i32, %c0_i32_0 : i32, i32, i32
  }
  func.func @transform_12(%arg0: i32, %arg1: i32) -> (i32, i32, i32) {
    %c0_i32 = arith.constant 0 : i32
    %c0_i32_0 = arith.constant 0 : i32
    %c0_i32_1 = arith.constant 0 : i32
    return %arg1, %c0_i32, %c0_i32_0 : i32, i32, i32
  }
  func.func @transform_13(%arg0: i32, %arg1: i32) -> (i32, i32, i32) {
    %c0_i32 = arith.constant 0 : i32
    %c0_i32_0 = arith.constant 0 : i32
    %c0_i32_1 = arith.constant 0 : i32
    return %arg1, %c0_i32, %c0_i32_0 : i32, i32, i32
  }
  func.func @transform_14(%arg0: i32, %arg1: i32) -> (i32, i32, i32) {
    %c0_i32 = arith.constant 0 : i32
    %c0_i32_0 = arith.constant 0 : i32
    %c0_i32_1 = arith.constant 0 : i32
    return %arg1, %c0_i32, %c0_i32_0 : i32, i32, i32
  }
  func.func @transform_15(%arg0: i32, %arg1: i32) -> (i32, i32) {
    %c0_i32 = arith.constant 0 : i32
    %c0_i32_0 = arith.constant 0 : i32
    return %arg0, %c0_i32 : i32, i32
  }
}

</mosaic_0001>

<bundles_post_ra>
// kernel: tpu_custom_call.1
= control target key start
LH: loop header
LB: loop body
LE: loop exit
PB: predicated region body
PF: predicated region fallthrough
CT: control target
= control target key end

     0   :  { %s2904_s0 = inlined_call_operand.vmem [shape: f32[16,64], index: 0, kind: input, shape index: {}]   ;;  %s2905_s1 = inlined_call_operand.vmem [shape: f32[1,64], index: 1, kind: input, shape index: {}]   ;;  %s2906_s2 = inlined_call_operand.vmem [shape: f32[1,64], index: 2, kind: input, shape index: {}]   ;;  %s2907_s3 = inlined_call_operand.vmem [shape: f32[2,1,64], index: 3, kind: input, shape index: {}]   ;;  %s2908_s4 = inlined_call_operand.vmem [shape: f32[2,1,64], index: 4, kind: input, shape index: {}]   ;;  %s2909_s5 = inlined_call_operand.vmem [shape: bf16[2,64,192], index: 5, kind: input, shape index: {}]   ;;  %s2910_s6 = inlined_call_operand.vmem [shape: f32[2,1,192], index: 6, kind: input, shape index: {}]   ;;  %s2911_s7 = inlined_call_operand.vmem [shape: bf16[2,64,64], index: 7, kind: input, shape index: {}]   ;;  %s2912_s8 = inlined_call_operand.vmem [shape: f32[2,1,64], index: 8, kind: input, shape index: {}]   ;;  %s2913_s9 = inlined_call_operand.vmem [shape: f32[2,1,64], index: 9, kind: input, shape index: {}]   ;;  %s2914_s10 = inlined_call_operand.vmem [shape: f32[2,1,64], index: 10, kind: input, shape index: {}]   ;;  %s2915_s11 = inlined_call_operand.vmem [shape: bf16[2,64,256], index: 11, kind: input, shape index: {}]   ;;  %s2916_s12 = inlined_call_operand.vmem [shape: f32[2,1,256], index: 12, kind: input, shape index: {}]   ;;  %s2917_s13 = inlined_call_operand.vmem [shape: bf16[2,256,64], index: 13, kind: input, shape index: {}]   ;;  %s2918_s14 = inlined_call_operand.vmem [shape: f32[2,1,64], index: 14, kind: input, shape index: {}]   ;;  %s2919_s15 = inlined_call_operand.hbm [shape: f32[16,64], index: 15, kind: output, shape index: {}]  }
   0x1   :  { %2935 = sst [smem:[#allocation20_spill]] %s2904_s0 }
   0x2   :  { %2936 = sst [smem:[#allocation21_spill]] %s2905_s1 }
   0x3   :  { %2937 = sst [smem:[#allocation22_spill]] %s2906_s2 }
   0x4   :  { %2938 = sst [smem:[#allocation23_spill]] %s2907_s3 }
   0x5   :  { %2939 = sst [smem:[#allocation24_spill]] %s2908_s4 }
   0x6   :  { %2940 = sst [smem:[#allocation25_spill]] %s2909_s5 }
   0x7   :  { %2941 = sst [smem:[#allocation26_spill]] %s2910_s6 }
   0x8   :  { %2942 = sst [smem:[#allocation27_spill]] %s2919_s15 }
   0x9   :  { %20 = vsyncpa [#allocation5], 0 }
   0xa   :  { %22 = vsyncpa [#allocation5 + $0x1], 0  ;;  %s2519_s18 = smov 0   ;;  %s2521_s19 = smov 0  }
   0xb   :  { %s2523_s20 = smov 0   ;;  %s2525_s21 = smov 0  }
   0xc   :  { %s2527_s22 = smov 0   ;;  %s2529_s23 = smov 0  }
   0xd   :  { %s2531_s24 = smov 0   ;;  %s2533_s25 = smov 0  }
   0xe LB: > { %2943 = sst [smem:[#allocation7_spill]] %s2397_s18  ;;  %s1982_s26 = sadd.s32 4294967295, %s2425_s25   ;;  %s2425_s25 = sphi %s2533_s25, %s28_s25   ;;  %s2421_s24 = sphi %s2531_s24, %s2988_s24   ;;  %s2417_s23 = sphi %s2529_s23, %s2987_s23   ;;  %s2413_s22 = sphi %s2527_s22, %s2986_s22   ;;  %s2409_s21 = sphi %s2525_s21, %s2985_s21   ;;  %s2405_s20 = sphi %s2523_s20, %s2984_s20   ;;  %s2401_s19 = sphi %s2521_s19, %s2983_s19   ;;  %s2397_s18 = sphi %s2519_s18, %s2982_s18  }
   0xf   : > { %2944 = sst [smem:[#allocation8_spill]] %s2401_s19  ;;  %s1983_s27 = sadd.s32 4294967294, %s2425_s25  }
  0x10   : > { %2945 = sst [smem:[#allocation9_spill]] %s2405_s20  ;;  %s37_s28 = sadd.s32 1, %s2417_s23 }
  0x11   : > { %2946 = sst [smem:[#allocation10_spill]] %s2409_s21  ;;  %p38_p0 = scmp.ge.s32.totalorder %s37_s28, 2 }
  0x12   : > { %2947 = sst [smem:[#allocation11_spill]] %s2413_s22  ;;  %s40_s29 = sadd.s32 1, %s2421_s24 }
  0x13   : > { %2948 = sst [smem:[#allocation12_spill]] %s2417_s23  ;;  %p437_p1 = scmp.ne.s32.totalorder %s2405_s20, %s2401_s19 }
  0x14   : > { %2949 = sst [smem:[#allocation13_spill]] %s2421_s24  ;;  %p438_p2 = scmp.eq.s32.totalorder %s1982_s26, 3 }
  0x15   : > { %2950 = sst [smem:[#allocation14_spill]] %s2425_s25  ;;  %s2990_s28 = smov (%p38_p0, %s37_s28), 0 }
  0x16   : > { %2951 = sst [smem:[#allocation15_spill]] %s2990_s28  ;;  %s2992_s29 = smov (!%p38_p0, %s40_s29), %s2421_s24 }
  0x17   : > { %p2568_p3 = por %p438_p2, %p437_p1  ;;  %p443_p4 = scmp.ne.s32.totalorder %s2401_s19, %s2397_s18 }
  0x18   : > { %p42_p5 = scmp.ge.s32.totalorder %s2992_s29, 2  ;;  %p444_p6 = scmp.eq.s32.totalorder %s1983_s27, 3 }
  0x19   : > { %s2952_s30 = scalar_select %p2568_p3, 1, 0 }
  0x1a   : > { %p1986_p7 = scmp.ge.s32.totalorder %s2425_s25, 1  ;;  %p557_p8 = scmp.lt.s32.totalorder %s2425_s25, 5 }
  0x1b   : > { %2953 = sst [smem:[#allocation16_spill]] %s2952_s30  ;;  %s2994_s29 = smov (%p42_p5, %s2992_s29), 0 }
  0x1c   : > { %2954 = sst [smem:[#allocation17_spill]] %s2994_s29  ;;  %p2578_p9 = por %p444_p6, %p443_p4 }
  0x1d   : > { %p558_p10 = pnand %p1986_p7, %p557_p8  ;;  %s424_s17 = ssub.s32 %s2421_s24, %s2994_s29 }
  0x1e   : > { %s2955_s16 = scalar_select %p2578_p9, 1, 0 }
  0x1f   : > { %s427_s26 = sadd.s32 1, %s2405_s20  ;;  %p425_p11 = scmp.eq.s32.totalorder %s424_s17, 0 }
  0x20   : > { %2956 = sst [smem:[#allocation18_spill]] %s2955_s16  ;;  %561 = sbr.rel (%p558_p10) target bundleno = 2977 (0xba1), region = 80 }
  0x21   : > { %s2586_s28 = scalar_select %p425_p11, %s2405_s20, %s427_s26  }
  0x22   : > { %s2924_s27 = sand.u32 (!%p558_p10), 1, %s2401_s19   ;;  %p650_p12 = scmp.lt.s32.totalorder (!%p558_p10), %s2413_s22, 1 }
  0x23   : > { %2957 = sst [smem:[#allocation19_spill]] %s2586_s28  ;;  %s2592_s23 = sshll.u32 (!%p558_p10), %s2924_s27, 3 }
  0x24   : > { %p654_p13 = scmp.lt.s32.totalorder (!%p558_p10), %s2409_s21, 1  ;;  %s2958_s0 = sld [smem:[#allocation20_spill]] (!%p558_p10) }
  0x25   : > { %s2961_s5 = sld [smem:[#allocation25_spill]] (!%p558_p10)  ;;  %s2962_s6 = sld [smem:[#allocation26_spill]] (!%p558_p10) }
  0x27   : > { %s651_s16 = scalar_select %p650_p12, %s2413_s22, 1 }
  0x28   : > { %s2597_s18 = scalar_select %p654_p13, %s2409_s21, 1 }
  0x29   : > { %s1988_s17 = sshll.u32 %s651_s16, 3  ;;  %s2963_s21 = sld [smem:[#allocation10_spill]] }
  0x2a   : > { %s653_s27 = scalar_lea.vmem %s2958_s0, %s1988_s17  ;;  %s2065_s19 = sshll.u32 %s2597_s18, 6 }
  0x2b   : > { %s2614_s1 = scalar_lea.vmem %s2961_s5, %s2065_s19  ;;  %s1991_s16 = sshll.u32 %s2597_s18, 1 }
  0x2c   : > { %s2620_s17 = scalar_lea.vmem %s2962_s6, %s1991_s16  ;;  %s2066_s26 = sshll.u32 %s2597_s18, 5 }
  0x2d   : > { %s2626_s20 = scalar_lea.vmem %s2911_s7, %s2066_s26  ;;  %s2643_s3 = scalar_lea.vmem %s2915_s11, %s2065_s19 }
  0x2e   : > { %s2648_s28 = scalar_lea.vmem %s2916_s12, %s1991_s16  ;;  %s2068_s15 = sshll.u32 %s2597_s18, 7 }
  0x2f   : > { %s699_s0 = scalar_lea.vmem %s2918_s14, %s2597_s18  ;;  %s2658_s4 = scalar_lea.vmem %s2917_s13, %s2068_s15 }
  0x30   : > { %s649_s5 = scalar_lea.vmem [#allocation4], %s2592_s23  ;;  %p1999_p0 = scmp.ne.s32.totalorder %s2963_s21, 0 }
  0x31   : > { %v705_v0 = vld [vmem:[%s653_s27] sm:$0xff] (!%p1999_p0)  ;;  %vm706_vm0 = vcmask (!%p1999_p0), 523264  }
  0x32   : > { %704 = sbr.rel (%p1999_p0) target bundleno = 57 (0x39), region = 84  ;;  %707 = vst.msk [vmem:[#allocation2] sm:$0xff] (!%p1999_p0), %vm706_vm0, %v705_v0 }
  0x39 PF: > { %v2662_v1 = vld [vmem:[#allocation2] sm:$0xff]  ;;  %vm717_vm1 = vcmask 523264   ;;  %v2260_v10 = vld [vmem:[%s2614_s1 + $0x14] ss:$8 sps:$4 sm:$0xff]   ;;  %v2262_v11 = vld [vmem:[%s2614_s1 + $0x10] ss:$8 sps:$4 sm:$0xff]   ;;  %v709_v27 = vlaneseq  ;;  %s2968_s19 = scalar_lea.vmem %s2912_s8, %s2597_s18  ;;  %s2969_s16 = scalar_lea.vmem %s2913_s9, %s2597_s18 }
  0x3a   : > { %v718_v2 = vsel %vm717_vm1, %v2662_v1, 0.0  ;;  %v2257_v8 = vld [vmem:[%s2614_s1 + $0x4] ss:$8 sps:$4 sm:$0xff]   ;;  %v2259_v9 = vld [vmem:[%s2614_s1] ss:$8 sps:$4 sm:$0xff]   ;;  %v2427_v12 = vmov 0  }
  0x3b   : > { %719 = vadd.xlane.f32.xlu0 %v718_v2  ;;  %810 = vmatprep.subr.bf16.mxu1 %v2257_v8  ;;  %v2263_v13 = vld [vmem:[%s2614_s1 + $0x24] ss:$8 sps:$4 sm:$0xff]   ;;  %v2265_v14 = vld [vmem:[%s2614_s1 + $0x20] ss:$8 sps:$4 sm:$0xff]   ;;  %v2266_v15 = vld [vmem:[%s2614_s1 + $0x34] ss:$8 sps:$4 sm:$0xff]  }
  0x3c   : > { %811 = vmatpush1.bf16.msra.mxu1 %v2259_v9  ;;  %842 = vmatprep.mubr.bf16.mxu1 %v2427_v12  ;;  %v2268_v16 = vld [vmem:[%s2614_s1 + $0x30] ss:$8 sps:$4 sm:$0xff]   ;;  %s2964_s30 = sld [smem:[#allocation23_spill]]  ;;  %s2966_s21 = sld [smem:[#allocation24_spill]]  ;;  %v2689_v28 = vshrl.u32 %v709_v27, 7  ;;  %v2428_v29 = vmov 0.0  }
  0x3d   : > { %812 = vmatprep.subr.bf16.mxu1 %v2260_v10  ;;  %2127 = vmatprep.subr.bf16.mxu0 %v2428_v29  ;;  %v755_v31 = vld [vmem:[%s2620_s17] sm:$0x3]  ;;  %vm2429_vm2 = vmmov 0   ;;  %s2430_s1 = smov 112   ;;  %s2431_s17 = smov 64   ;;  %vm856_vm3 = vcmask 130048  }
  0x3e   : > { %v759_v30 = vsub.s32 0, %v2689_v28  ;;  %2129 = vmatprep.mubr.msk.bf16.mxu0 %vm2429_vm2, %v2428_v29  ;;  %s2432_s24 = smov 48   ;;  %s2433_s26 = smov 32   ;;  %v763_v39 = vsub.s32 1, %v2689_v28  ;;  %vm919_vm4 = vcmask 1043456   ;;  %v712_v55 = vand.u32 127, %v709_v27 }
  0x3f   : > { %s2434_s15 = smov 96   ;;  %s2435_s25 = smov 16   ;;  %v2437_v56 = vmov -1e+30   ;;  %vm903_vm6 = vcmask 64512   ;;  %vm964_vm7 = vcmask 125952  }
  0x40   : > { %813 = vmatpush1.bf16.msra.mxu1 %v2262_v11  ;;  %v760_v32 = vrot.slane %v755_v31, %v759_v30  ;;  %s2436_s2 = smov 80   ;;  %v764_v40 = vrot.slane %v755_v31, %v763_v39  ;;  %vm713_vm5 = vcmp.le.s32.totalorder %v712_v55, %v2689_v28  ;;  %vm1084_vm8 = vcmask 257152  }
  0x41   : > { %814 = vmatprep.subr.bf16.mxu1 %v2263_v13  ;;  %v714_v57 = vsel %vm713_vm5, 0.0, %v2437_v56  ;;  %vm1203_vm9 = vcmask 388352   ;;  %vm1322_vm10 = vcmask 519552  }
  0x42   : > { %s2965_s27 = scalar_lea.vmem %s2964_s30, %s2597_s18  ;;  %s2967_s29 = scalar_lea.vmem %s2966_s21, %s2597_s18 }
  0x43   : > { %v2000_v21 = vld [vmem:[%s2965_s27] ss:$0 sm:$0xff]  ;;  %s2970_s21 = scalar_lea.vmem %s2914_s10, %s2597_s18 }
  0x44   : > { %815 = vmatpush1.bf16.msra.mxu1 %v2265_v14  ;;  %v2001_v23 = vld [vmem:[%s2967_s29] ss:$0 sm:$0xff]  ;;  %s2971_s29 = sld [smem:[#allocation10_spill]] }
  0x45   : > { %816 = vmatprep.subr.bf16.mxu1 %v2266_v15 }
  0x48   : > { %817 = vmatpush1.bf16.msra.mxu1 %v2268_v16 }
  0x49   : > { %2115 = vmatprep.subr.bf16.mxu1 %v2428_v29 }
  0x4a   : > { %p2058_p1 = scmp.ne.s32.totalorder %s2971_s29, 1 }
  0xc8   : > { %v720_v3 = vpop.xlane.xlu0 %719 }
  0xc9   : > { %v722_v4 = vmul.f32 0.015625, %v720_v3 }
  0xcb   : > { %v723_v5 = vsub.f32 %v2662_v1, %v722_v4 }
  0xcd   : > { %v724_v6 = vmul.f32 %v723_v5, %v723_v5 }
  0xcf   : > { %v725_v7 = vsel %vm717_vm1, %v724_v6, 0.0 }
  0xd0   : > { %726 = vadd.xlane.f32.xlu0 %v725_v7 }
 0x15d   : > { %v727_v17 = vpop.xlane.xlu0 %726 }
 0x15e   : > { %v728_v18 = vmul.f32 0.015625, %v727_v17 }
 0x160   : > { %v729_v19 = vadd.f32 1e-05, %v728_v18 }
 0x162   : > { %2301 = vrsqrt.f32 %v729_v19 }
 0x16c   : > { %v2302_v20 = vpop.eup %2301 }
 0x16d   : > { %v731_v22 = vmul.f32 %v2302_v20, %v723_v5 }
 0x16f   : > { %v738_v24 = vmul.f32 %v2000_v21, %v731_v22 }
 0x171   : > { %v745_v25 = vadd.f32 %v2001_v23, %v738_v24 }
 0x173   : > { %v746_v26 = vpack.c.bf16 %v745_v25, %v745_v25 }
 0x175   : > { %2010 = vmatmul.mubr.msk.bf16.vlgmr.msra.gmra.mrb[0].mxu1 %vm717_vm1, %v746_v26 }
 0x176   : > { %2117 = vmatprep.mubr.msk.bf16.mxu1 %vm2429_vm2, %v2428_v29 }
 0x248   : > { %v844_v33 = vpop.f32.mrb[0].mxu1 }
 0x249   : > { %v845_v34 = vadd.f32 %v844_v33, %v760_v32  ;;  %v846_v35 = vpop.f32.mrb[1].mxu1 }
 0x24a   : > { %v848_v36 = vpop.f32.mrb[2].mxu1  ;;  %v847_v42 = vadd.f32 %v846_v35, %v764_v40 }
 0x24b   : > { %v851_v37 = vpack.c.bf16 %v845_v34, %v845_v34  ;;  %v849_v38 = vpop.f32.mrb[3].mxu1 }
 0x24c   : > { %v2712_v45 = vpack.c.bf16 %v847_v42, %v847_v42 }
 0x24d   : > { %966 = vrot.lane.b32.xlu0 %v851_v37, %s2430_s1  ;;  %854 = vrot.lane.b32.xlu1 %v851_v37, %s2431_s17 }
 0x24e   : > { %v921_v48 = vsel %vm919_vm4, %v2712_v45, 0 }
 0x251   : > { %968 = vrot.lane.b32.xlu1 %v851_v37, %s2432_s24 }
 0x255   : > { %1088 = vrot.lane.b32.xlu1 %v851_v37, %s2433_s26 }
 0x259   : > { %1086 = vrot.lane.b32.xlu1 %v851_v37, %s2434_s15 }
 0x25d   : > { %1207 = vrot.lane.b32.xlu1 %v851_v37, %s2435_s25 }
 0x261   : > { %1205 = vrot.lane.b32.xlu1 %v851_v37, %s2436_s2 }
 0x2bf   : > { %v855_v41 = vpop.permute.xlu1 %854  ;;  %v967_v49 = vpop.permute.xlu0 %966 }
 0x2c0   : > { %v861_v43 = vsel %vm856_vm3, %v855_v41, 0 }
 0x2c1   : > { %2116 = vmatpush3.bf16.xpose.msra.mxu1 %v861_v43 }
 0x2c2   : > { %2121 = vmatprep.subr.bf16.mxu1 %v2428_v29 }
 0x2c3   : > { %v969_v44 = vpop.permute.xlu1 %968 }
 0x2c4   : > { %v974_v46 = vsel %vm856_vm3, %v969_v44, 0 }
 0x2c5   : > { %2128 = vmatpush3.bf16.xpose.msra.mxu0 %v974_v46 }
 0x2c6   : > { %2139 = vmatprep.subr.bf16.mxu0 %v2428_v29 }
 0x2c7   : > { %v1089_v47 = vpop.permute.xlu1 %1088 }
 0x2c8   : > { %2118 = vmatmul.mubr.msk.bf16.vlgmr.msra.gmra.mrb[4].mxu1 %vm856_vm3, %v851_v37  ;;  %v1094_v51 = vsel %vm856_vm3, %v1089_v47, 0 }
 0x2c9   : > { %2122 = vmatpush3.bf16.msra.mxu1 %v921_v48  ;;  %2123 = vmatprep.mubr.msk.bf16.mxu1 %vm2429_vm2, %v2428_v29 }
 0x2ca   : > { %2133 = vmatprep.subr.bf16.mxu1 %v2428_v29 }
 0x2cb   : > { %v1087_v50 = vpop.permute.xlu1 %1086 }
 0x2cc   : > { %2130 = vmatmul.mubr.msk.bf16.vlgmr.msra.gmra.mrb[0].mxu0 %vm856_vm3, %v967_v49 }
 0x2cd   : > { %2140 = vmatpush3.bf16.xpose.msra.mxu0 %v1094_v51  ;;  %2141 = vmatprep.mubr.msk.bf16.mxu0 %vm2429_vm2, %v2428_v29 }
 0x2ce   : > { %2151 = vmatprep.subr.bf16.mxu0 %v2428_v29 }
 0x2cf   : > { %v1208_v52 = vpop.permute.xlu1 %1207 }
 0x2d0   : > { %v1213_v53 = vsel %vm856_vm3, %v1208_v52, 0 }
 0x2d3   : > { %v1206_v54 = vpop.permute.xlu1 %1205 }
 0x2d4   : > { %2142 = vmatmul.mubr.msk.bf16.vlgmr.msra.gmra.mrb[4].mxu0 %vm856_vm3, %v1087_v50 }
 0x2d5   : > { %2152 = vmatpush3.bf16.xpose.msra.mxu0 %v1213_v53  ;;  %2153 = vmatprep.mubr.msk.bf16.mxu0 %vm2429_vm2, %v2428_v29 }
 0x2d6   : > { %2163 = vmatprep.subr.bf16.mxu0 %v2428_v29 }
 0x2dc   : > { %2154 = vmatmul.mubr.msk.bf16.vlgmr.msra.gmra.mrb[8].mxu0 %vm856_vm3, %v1206_v54 }
 0x2dd   : > { %2171 = vmatprep.mubr.msk.bf16.mxu0 %vm2429_vm2, %v2428_v29 }
 0x39b   : > { %v897_v58 = vpop.f32.mrb[4].mxu1 }
 0x39c   : > { %v898_v59 = vadd.f32 %v897_v58, %v714_v57  ;;  %v2119_v60 = vpop.f32.mrb[5].mxu1 }
 0x39d   : > { %v900_v61 = vpop.f32.mrb[6].mxu1 }
 0x39e   : > { %v2120_v62 = vpop.f32.mrb[7].mxu1  ;;  %v904_v63 = vsel %vm903_vm6, %v898_v59, -inf }
 0x39f   : > { %905 = vmax.xlane.f32.xlu1 %v904_v63  ;;  %v1010_v0 = vpop.f32.mrb[0].mxu0 }
 0x3a0   : > { %v1011_v2 = vadd.f32 %v1010_v0, %v714_v57  ;;  %v2131_v3 = vpop.f32.mrb[1].mxu0 }
 0x3a1   : > { %v1013_v4 = vpop.f32.mrb[2].mxu0 }
 0x3a2   : > { %v2132_v5 = vpop.f32.mrb[3].mxu0  ;;  %v1016_v6 = vsel %vm903_vm6, %v1011_v2, -inf }
 0x3a3   : > { %1017 = vmax.xlane.f32.xlu0 %v1016_v6 }
 0x3a7   : > { %v1130_v7 = vpop.f32.mrb[4].mxu0 }
 0x3a8   : > { %v1131_v8 = vadd.f32 %v1130_v7, %v714_v57  ;;  %v2143_v9 = vpop.f32.mrb[5].mxu0 }
 0x3a9   : > { %v1133_v10 = vpop.f32.mrb[6].mxu0 }
 0x3aa   : > { %v2144_v11 = vpop.f32.mrb[7].mxu0  ;;  %v1136_v13 = vsel %vm903_vm6, %v1131_v8, -inf }
 0x3ab   : > { %1137 = vmax.xlane.f32.xlu1 %v1136_v13 }
 0x3af   : > { %v1249_v14 = vpop.f32.mrb[8].mxu0 }
 0x3b0   : > { %v1250_v15 = vadd.f32 %v1249_v14, %v714_v57  ;;  %v2155_v16 = vpop.f32.mrb[9].mxu0  ;;  %v2269_v14 = vld [vmem:[%s2626_s20] sm:$0xff]  }
 0x3b1   : > { %v1252_v17 = vpop.f32.mrb[10].mxu0  ;;  %2164 = vmatpush3.bf16.msra.mxu0 %v2269_v14  ;;  %v2297_v14 = vld [vmem:[%s2658_s4 + $0x70] sm:$0xff]  }
 0x3b2   : > { %v2156_v18 = vpop.f32.mrb[11].mxu0  ;;  %v1255_v19 = vsel %vm903_vm6, %v1250_v15, -inf  ;;  %2165 = vmatprep.subr.bf16.mxu0 %v2428_v29  ;;  %v2272_v17 = vld [vmem:[%s2626_s20 + $0x18] sm:$0xff]  }
 0x3b3   : > { %1256 = vmax.xlane.f32.xlu0 %v1255_v19 }
 0x42c   : > { %v906_v20 = vpop.xlane.xlu1 %905 }
 0x42d   : > { %v907_v21 = vsub.f32 %v898_v59, %v906_v20 }
 0x42f   : > { %v908_v22 = vmul.f32 1.442695, %v907_v21 }
 0x430   : > { %v1018_v23 = vpop.xlane.xlu0 %1017 }
 0x431   : > { %2303 = vpow2.f32 %v908_v22  ;;  %v1019_v24 = vsub.f32 %v1011_v2, %v1018_v23 }
 0x433   : > { %v1020_v25 = vmul.f32 1.442695, %v1019_v24 }
 0x435   : > { %2305 = vpow2.f32 %v1020_v25 }
 0x438   : > { %v1138_v38 = vpop.xlane.xlu1 %1137 }
 0x439   : > { %v1139_v40 = vsub.f32 %v1131_v8, %v1138_v38 }
 0x43b   : > { %v2304_v26 = vpop.eup %2303  ;;  %v1140_v41 = vmul.f32 1.442695, %v1139_v40 }
 0x43c   : > { %v910_v27 = vsel %vm903_vm6, %v2304_v26, 0.0 }
 0x43d   : > { %911 = vadd.xlane.f32.xlu1 %v910_v27 }
 0x43f   : > { %v2306_v31 = vpop.eup %2305 }
 0x440   : > { %v1257_v32 = vpop.xlane.xlu0 %1256  ;;  %v1022_v33 = vsel %vm903_vm6, %v2306_v31, 0.0 }
 0x441   : > { %v1258_v34 = vsub.f32 %v1250_v15, %v1257_v32  ;;  %1023 = vadd.xlane.f32.xlu0 %v1022_v33  ;;  %v2271_v15 = vld [vmem:[%s2626_s20 + $0x10] sm:$0xff]  }
 0x443   : > { %v1259_v35 = vmul.f32 1.442695, %v1258_v34  ;;  %v2027_v34 = vld [vmem:[%s2968_s19] ss:$0 sm:$0xff] }
 0x445   : > { %2307 = vpow2.f32 %v1259_v35 }
 0x446   : > { %2309 = vpow2.f32 %v1140_v41 }
 0x44e   : > { %1029 = vrot.lane.b32.xlu1 %v2712_v45, %s2430_s1  ;;  %s2972_s1 = sld [smem:[#allocation21_spill]] (!%p2058_p1) }
 0x44f   : > { %v2308_v36 = vpop.eup %2307 }
 0x450   : > { %v1261_v37 = vsel %vm903_vm6, %v2308_v36, 0.0  ;;  %v2310_v42 = vpop.eup %2309 }
 0x451   : > { %1262 = vadd.xlane.f32.xlu0 %v1261_v37  ;;  %v1142_v43 = vsel %vm903_vm6, %v2310_v42, 0.0 }
 0x467   : > { %1148 = vrot.lane.b32.xlu0 %v2712_v45, %s2434_s15 }
 0x472   : > { %1143 = vadd.xlane.f32.xlu1 %v1142_v43 }
 0x483   : > { %1267 = vrot.lane.b32.xlu1 %v2712_v45, %s2436_s2 }
 0x4ca   : > { %v912_v44 = vpop.xlane.xlu1 %911 }
 0x4cb   : > { %2311 = vrcp.f32 %v912_v44 }
 0x4ce   : > { %v1024_v46 = vpop.xlane.xlu0 %1023  ;;  %v1030_v49 = vpop.permute.xlu1 %1029 }
 0x4cf   : > { %2313 = vrcp.f32 %v1024_v46  ;;  %v1035_v52 = vsel %vm919_vm4, %v1030_v49, 0  ;;  %v2278_v49 = vld [vmem:[%s2643_s3 + $0x14] ss:$8 sps:$4 sm:$0xff]  }
 0x4d5   : > { %v2312_v47 = vpop.eup %2311 }
 0x4d6   : > { %v914_v48 = vmul.f32 %v2312_v47, %v2304_v26  ;;  %v2275_v47 = vld [vmem:[%s2643_s3 + $0x4] ss:$8 sps:$4 sm:$0xff]  }
 0x4d8   : > { %v915_v50 = vpack.c.bf16 %v914_v48, %v914_v48  ;;  %v2273_v48 = vld [vmem:[%s2643_s3] ss:$8 sps:$4 sm:$0xff]  }
 0x4d9   : > { %v2314_v51 = vpop.eup %2313 }
 0x4da   : > { %2124 = vmatmul.mubr.msk.bf16.vlgmr.msra.gmra.mrb[8].mxu1 %vm903_vm6, %v915_v50  ;;  %v1026_v53 = vmul.f32 %v2314_v51, %v2306_v31  ;;  %v2276_v50 = vld [vmem:[%s2643_s3 + $0x10] ss:$8 sps:$4 sm:$0xff]   ;;  %v2281_v51 = vld [vmem:[%s2643_s3 + $0x24] ss:$8 sps:$4 sm:$0xff]  }
 0x4db   : > { %2134 = vmatpush3.bf16.msra.mxu1 %v1035_v52  ;;  %2135 = vmatprep.mubr.msk.bf16.mxu1 %vm2429_vm2, %v2428_v29  ;;  %v2279_v52 = vld [vmem:[%s2643_s3 + $0x20] ss:$8 sps:$4 sm:$0xff]  }
 0x4dc   : > { %2145 = vmatprep.subr.bf16.mxu1 %v2428_v29  ;;  %v1027_v54 = vpack.c.bf16 %v1026_v53, %v1026_v53  ;;  %v2282_v53 = vld [vmem:[%s2643_s3 + $0x30] ss:$8 sps:$4 sm:$0xff]  }
 0x4de   : > { %v1263_v45 = vpop.xlane.xlu0 %1262 }
 0x4e2   : > { %v1149_v55 = vpop.permute.xlu0 %1148  ;;  %2136 = vmatmul.mubr.msk.bf16.vlgmr.msra.gmra.mrb[12].mxu1 %vm903_vm6, %v1027_v54 }
 0x4e3   : > { %v1154_v56 = vsel %vm919_vm4, %v1149_v55, 0  ;;  %2147 = vmatprep.mubr.msk.bf16.mxu1 %vm2429_vm2, %v2428_v29 }
 0x4e4   : > { %2146 = vmatpush3.bf16.msra.mxu1 %v1154_v56 }
 0x4e5   : > { %2157 = vmatprep.subr.bf16.mxu1 %v2428_v29 }
 0x4ff   : > { %v1144_v57 = vpop.xlane.xlu1 %1143 }
 0x500   : > { %2315 = vrcp.f32 %v1144_v57 }
 0x501   : > { %2317 = vrcp.f32 %v1263_v45  ;;  %v2284_v45 = vld [vmem:[%s2643_s3 + $0x34] ss:$8 sps:$4 sm:$0xff]  }
 0x503   : > { %v1268_v60 = vpop.permute.xlu1 %1267 }
 0x504   : > { %v1273_v63 = vsel %vm919_vm4, %v1268_v60, 0  ;;  %v2029_v60 = vld [vmem:[%s2970_s21] ss:$0 sm:$0xff] }
 0x50a   : > { %v2316_v58 = vpop.eup %2315 }
 0x50b   : > { %v1146_v59 = vmul.f32 %v2316_v58, %v2310_v42  ;;  %v2318_v62 = vpop.eup %2317  ;;  %v2028_v58 = vld [vmem:[%s2969_s16] ss:$0 sm:$0xff] }
 0x50c   : > { %v1265_v0 = vmul.f32 %v2318_v62, %v2308_v36 }
 0x50d   : > { %v1147_v61 = vpack.c.bf16 %v1146_v59, %v1146_v59 }
 0x50e   : > { %v1266_v2 = vpack.c.bf16 %v1265_v0, %v1265_v0  ;;  %v2285_v0 = vld [vmem:[%s2658_s4 + $0x40] sm:$0xff]  }
 0x50f   : > { %2148 = vmatmul.mubr.msk.bf16.vlgmr.msra.gmra.mrb[16].mxu1 %vm903_vm6, %v1147_v61 }
 0x510   : > { %2158 = vmatpush3.bf16.msra.mxu1 %v1273_v63  ;;  %2159 = vmatprep.mubr.msk.bf16.mxu1 %vm2429_vm2, %v2428_v29 }
 0x511   : > { %1502 = vmatprep.subr.bf16.mxu1 %v2275_v47 }
 0x517   : > { %2160 = vmatmul.mubr.msk.bf16.vlgmr.msra.gmra.mrb[20].mxu1 %vm903_vm6, %v1266_v2  ;;  %v2286_v2 = vld [vmem:[%s2658_s4] sm:$0xff]  }
 0x518   : > { %1534 = vmatprep.mubr.bf16.mxu1 %v2427_v12  ;;  %v2270_v12 = vld [vmem:[%s2626_s20 + $0x8] sm:$0xff]   ;;  %1503 = vmatpush1.bf16.msra.mxu1 %v2273_v48 }
 0x519   : > { %2166 = vmatpush3.bf16.msra.mxu0 %v2270_v12  ;;  %1504 = vmatprep.subr.bf16.mxu1 %v2278_v49  ;;  %v2298_v12 = vld [vmem:[%s2658_s4 + $0x30] sm:$0xff]  }
 0x51a   : > { %2167 = vmatprep.subr.bf16.mxu0 %v2428_v29 }
 0x51c   : > { %1505 = vmatpush1.bf16.msra.mxu1 %v2276_v50 }
 0x51d   : > { %2168 = vmatpush3.bf16.msra.mxu0 %v2271_v15  ;;  %1506 = vmatprep.subr.bf16.mxu1 %v2281_v51  ;;  %v2299_v15 = vld [vmem:[%s2658_s4 + $0x78] sm:$0xff]  }
 0x51e   : > { %2169 = vmatprep.subr.bf16.mxu0 %v2428_v29 }
 0x520   : > { %1507 = vmatpush1.bf16.msra.mxu1 %v2279_v52 }
 0x521   : > { %2170 = vmatpush3.bf16.msra.mxu0 %v2272_v17  ;;  %1508 = vmatprep.subr.bf16.mxu1 %v2284_v45  ;;  %v1447_v17 = vld [vmem:[%s2648_s28] sm:$0x3] }
 0x522   : > { %2093 = vmatprep.subr.bf16.mxu0 %v2285_v0 }
 0x524   : > { %1509 = vmatpush1.bf16.msra.mxu1 %v2282_v53 }
 0x5ad   : > { %v957_v3 = vpop.f32.mrb[8].mxu1 }
 0x5ae   : > { %v963_v4 = vpack.c.bf16 %v957_v3, %v957_v3  ;;  %v2125_v5 = vpop.f32.mrb[9].mxu1  ;;  %v2287_v3 = vld [vmem:[%s2658_s4 + $0x48] sm:$0xff]  }
 0x5af   : > { %v960_v6 = vpop.f32.mrb[10].mxu1  ;;  %v2289_v5 = vld [vmem:[%s2658_s4 + $0x50] sm:$0xff]  }
 0x5b0   : > { %965 = vst.msk [vmem:[#allocation3] sm:$0xf] %vm964_vm7, %v963_v4  ;;  %v2126_v7 = vpop.f32.mrb[11].mxu1  ;;  %v2288_v4 = vld [vmem:[%s2658_s4 + $0x8] sm:$0xff]   ;;  %v2290_v6 = vld [vmem:[%s2658_s4 + $0x10] sm:$0xff]  }
 0x5b1   : > { %v2291_v7 = vld [vmem:[%s2658_s4 + $0x58] sm:$0xff]  }
 0x5b5   : > { %v1071_v8 = vpop.f32.mrb[12].mxu1 }
 0x5b6   : > { %v2069_v9 = vpack.c.bf16 %v1071_v8, %v1071_v8  ;;  %v2137_v10 = vpop.f32.mrb[13].mxu1  ;;  %v2292_v8 = vld [vmem:[%s2658_s4 + $0x18] sm:$0xff]  }
 0x5b7   : > { %v1074_v11 = vpop.f32.mrb[14].mxu1  ;;  %v2294_v10 = vld [vmem:[%s2658_s4 + $0x20] sm:$0xff]  }
 0x5b8   : > { %1081 = vrot.lane.b32.xlu1 %v2069_v9, %s2435_s25  ;;  %v2138_v13 = vpop.f32.mrb[15].mxu1  ;;  %v2293_v9 = vld [vmem:[%s2658_s4 + $0x60] sm:$0xff]   ;;  %v2295_v11 = vld [vmem:[%s2658_s4 + $0x68] sm:$0xff]  }
 0x5b9   : > { %v2296_v13 = vld [vmem:[%s2658_s4 + $0x28] sm:$0xff]  }
 0x5e2   : > { %v1190_v16 = vpop.f32.mrb[16].mxu1 }
 0x5e3   : > { %v2070_v18 = vpack.c.bf16 %v1190_v16, %v1190_v16  ;;  %v2149_v19 = vpop.f32.mrb[17].mxu1  ;;  %v2300_v16 = vld [vmem:[%s2658_s4 + $0x38] sm:$0xff]  }
 0x5e4   : > { %v1193_v20 = vpop.f32.mrb[18].mxu1  ;;  %v1456_v19 = vrot.slane %v1447_v17, %v763_v39 }
 0x5e5   : > { %1200 = vrot.lane.b32.xlu0 %v2070_v18, %s2433_s26  ;;  %v2150_v21 = vpop.f32.mrb[19].mxu1  ;;  %v1452_v18 = vrot.slane %v1447_v17, %v759_v30  ;;  %s2973_s26 = sld [smem:[#allocation22_spill]] (!%p2058_p1) }
 0x5ea   : > { %v1309_v22 = vpop.f32.mrb[20].mxu1 }
 0x5eb   : > { %v2071_v23 = vpack.c.bf16 %v1309_v22, %v1309_v22  ;;  %v2161_v24 = vpop.f32.mrb[21].mxu1 }
 0x5ec   : > { %v1312_v25 = vpop.f32.mrb[22].mxu1 }
 0x5ed   : > { %1319 = vrot.lane.b32.xlu1 %v2071_v23, %s2432_s24  ;;  %v2162_v26 = vpop.f32.mrb[23].mxu1 }
 0x62a   : > { %v1082_v27 = vpop.permute.xlu1 %1081 }
 0x62b   : > { %1085 = vst.msk [vmem:[#allocation3] sm:$0xf] %vm1084_vm8, %v1082_v27 }
 0x657   : > { %v1201_v31 = vpop.permute.xlu0 %1200 }
 0x658   : > { %1204 = vst.msk [vmem:[#allocation3] sm:$0xf] %vm1203_vm9, %v1201_v31 }
 0x65f   : > { %v1320_v29 = vpop.permute.xlu1 %1319 }
 0x660   : > { %1323 = vst.msk [vmem:[#allocation3] sm:$0xf] %vm1322_vm10, %v1320_v29 }
 0x667   : > { %v1324_v32 = vld [vmem:[#allocation3] sm:$0xf] }
 0x668   : > { %2172 = vmatmul.mubr.msk.bf16.vlgmr.msra.gmra.mrb[12].mxu0 %vm717_vm1, %v1324_v32 }
 0x669   : > { %2094 = vmatpush3.bf16.msra.mxu0 %v2286_v2 }
 0x66a   : > { %2095 = vmatprep.subr.bf16.mxu0 %v2287_v3 }
 0x66d   : > { %2096 = vmatpush3.bf16.msra.mxu0 %v2288_v4 }
 0x66e   : > { %2097 = vmatprep.subr.bf16.mxu0 %v2289_v5 }
 0x671   : > { %2098 = vmatpush3.bf16.msra.mxu0 %v2290_v6 }
 0x672   : > { %2099 = vmatprep.subr.bf16.mxu0 %v2291_v7 }
 0x675   : > { %2100 = vmatpush3.bf16.msra.mxu0 %v2292_v8 }
 0x676   : > { %2101 = vmatprep.subr.bf16.mxu0 %v2293_v9 }
 0x679   : > { %2102 = vmatpush3.bf16.msra.mxu0 %v2294_v10 }
 0x67a   : > { %2103 = vmatprep.subr.bf16.mxu0 %v2295_v11 }
 0x67d   : > { %2104 = vmatpush3.bf16.msra.mxu0 %v2296_v13 }
 0x67e   : > { %2105 = vmatprep.subr.bf16.mxu0 %v2297_v14 }
 0x681   : > { %2106 = vmatpush3.bf16.msra.mxu0 %v2298_v12 }
 0x682   : > { %2107 = vmatprep.subr.bf16.mxu0 %v2299_v15 }
 0x685   : > { %2108 = vmatpush3.bf16.msra.mxu0 %v2300_v16 }
 0x73b   : > { %v1394_v33 = vpop.f32.mrb[12].mxu0 }
 0x73c   : > { %v1400_v35 = vadd.f32 %v1394_v33, %v2662_v1  ;;  %v2173_v36 = vpop.f32.mrb[13].mxu0 }
 0x73d   : > { %v1397_v37 = vpop.f32.mrb[14].mxu0 }
 0x73e   : > { %v2784_v38 = vadd.f32 %v2027_v34, %v1400_v35  ;;  %v2174_v40 = vpop.f32.mrb[15].mxu0 }
 0x740   : > { %v1411_v41 = vsel %vm717_vm1, %v2784_v38, 0.0 }
 0x741   : > { %1412 = vadd.xlane.f32.xlu0 %v1411_v41 }
 0x7ce   : > { %v1413_v42 = vpop.xlane.xlu0 %1412 }
 0x7cf   : > { %v1414_v43 = vmul.f32 0.015625, %v1413_v42  ;;  %v2041_v42 = vld [vmem:[%s699_s0] ss:$0 sm:$0xff] }
 0x7d1   : > { %v1415_v44 = vsub.f32 %v2784_v38, %v1414_v43 }
 0x7d3   : > { %v1416_v46 = vmul.f32 %v1415_v44, %v1415_v44 }
 0x7d5   : > { %v1417_v1 = vsel %vm717_vm1, %v1416_v46, 0.0 }
 0x7d6   : > { %1418 = vadd.xlane.f32.xlu1 %v1417_v1 }
 0x863   : > { %v1419_v54 = vpop.xlane.xlu1 %1418 }
 0x864   : > { %v1420_v55 = vmul.f32 0.015625, %v1419_v54 }
 0x866   : > { %v1421_v56 = vadd.f32 1e-05, %v1420_v55 }
 0x868   : > { %2319 = vrsqrt.f32 %v1421_v56 }
 0x872   : > { %v2320_v57 = vpop.eup %2319 }
 0x873   : > { %v1423_v59 = vmul.f32 %v2320_v57, %v1415_v44  ;;  %v2059_v57 = vld [vmem:[%s2972_s1] ss:$0 sm:$0xff] (!%p2058_p1) }
 0x875   : > { %v1430_v61 = vmul.f32 %v2028_v58, %v1423_v59  ;;  %v2060_v59 = vld [vmem:[%s2973_s26] ss:$0 sm:$0xff] (!%p2058_p1) }
 0x877   : > { %v1437_v62 = vadd.f32 %v2029_v60, %v1430_v61 }
 0x879   : > { %v1438_v63 = vpack.c.bf16 %v1437_v62, %v1437_v62 }
 0x87b   : > { %2038 = vmatmul.mubr.msk.bf16.vlgmr.msra.gmra.mrb[24].mxu1 %vm717_vm1, %v1438_v63 }
 0x94e   : > { %v1536_v20 = vpop.f32.mrb[24].mxu1 }
 0x94f   : > { %v1537_v21 = vadd.f32 %v1536_v20, %v1452_v18  ;;  %v1538_v22 = vpop.f32.mrb[25].mxu1 }
 0x950   : > { %v1539_v23 = vadd.f32 %v1538_v22, %v1456_v19  ;;  %v1540_v24 = vpop.f32.mrb[26].mxu1 }
 0x951   : > { %v2039_v25 = vmul.f32 -1.702, %v1537_v21  ;;  %v1541_v26 = vpop.f32.mrb[27].mxu1 }
 0x952   : > { %v2040_v27 = vmul.f32 -1.702, %v1539_v23 }
 0x953   : > { %v1547_v31 = vmul.f32 1.442695, %v2039_v25 }
 0x954   : > { %v1549_v29 = vmul.f32 1.442695, %v2040_v27 }
 0x955   : > { %2321 = vpow2.f32 %v1547_v31 }
 0x956   : > { %2323 = vpow2.f32 %v1549_v29 }
 0x95f   : > { %v2322_v32 = vpop.eup %2321 }
 0x960   : > { %v2324_v33 = vpop.eup %2323  ;;  %v1551_v34 = vadd.f32 1.0, %v2322_v32 }
 0x961   : > { %v1552_v30 = vadd.f32 1.0, %v2324_v33 }
 0x962   : > { %2325 = vrcp.f32 %v1551_v34 }
 0x963   : > { %2327 = vrcp.f32 %v1552_v30 }
 0x96c   : > { %v2326_v28 = vpop.eup %2325 }
 0x96d   : > { %v2328_v39 = vpop.eup %2327  ;;  %v1557_v35 = vmul.f32 %v2326_v28, %v1537_v21 }
 0x96e   : > { %v1558_v36 = vmul.f32 %v2328_v39, %v1539_v23 }
 0x96f   : > { %v1559_v40 = vpack.c.bf16 %v1557_v35, %v1557_v35 }
 0x970   : > { %v1560_v37 = vpack.c.bf16 %v1558_v36, %v1558_v36 }
 0x972   : > { %1728 = vmatprep.mubr.bf16.mxu0 %v1560_v37 }
 0x973   : > { %1729 = vmatmul.mubr.bf16.vlgmr.msra.gmra.mrb[16].mxu0 %v1559_v40 }
 0xa46   : > { %v2109_v41 = vpop.f32.mrb[16].mxu0 }
 0xa47   : > { %v2110_v43 = vpop.f32.mrb[17].mxu0 }
 0xa48   : > { %v2111_v44 = vadd.f32 %v2110_v43, %v2109_v41  ;;  %v2112_v46 = vpop.f32.mrb[18].mxu0  ;;  %1741 = sbr.rel (%p2058_p1) target bundleno = 2952 (0xb88), region = 88 }
 0xa49   : > { %v2113_v1 = vpop.f32.mrb[19].mxu0 }
 0xa4a   : > { %v1731_v47 = vadd.f32 %v2111_v44, %v2041_v42 }
 0xa4c   : > { %v1736_v48 = vadd.f32 %v1731_v47, %v2784_v38 }
 0xa4e   : > { %1737 = vst.msk [vmem:[#allocation2] sm:$0xff] %vm717_vm1, %v1736_v48  ;;  %v1744_v49 = vsel (!%p2058_p1), %vm717_vm1, %v1736_v48, 0.0 }
 0xa4f   : > { %1745 = vadd.xlane.f32.xlu0 %v1744_v49 }
 0xadc   : > { %v1746_v50 = vpop.xlane.xlu0 %1745 }
 0xadd   : > { %v1747_v51 = vmul.f32 0.015625, %v1746_v50 }
 0xadf   : > { %v1748_v52 = vsub.f32 %v1736_v48, %v1747_v51 }
 0xae1   : > { %v1749_v53 = vmul.f32 %v1748_v52, %v1748_v52 }
 0xae3   : > { %v1750_v45 = vsel %vm717_vm1, %v1749_v53, 0.0 }
 0xae4   : > { %1751 = vadd.xlane.f32.xlu0 %v1750_v45 }
 0xb71   : > { %v1752_v54 = vpop.xlane.xlu0 %1751 }
 0xb72   : > { %v1753_v55 = vmul.f32 0.015625, %v1752_v54 }
 0xb74   : > { %v1754_v56 = vadd.f32 1e-05, %v1753_v55 }
 0xb76   : > { %2329 = vrsqrt.f32 %v1754_v56 }
 0xb80   : > { %v2330_v38 = vpop.eup %2329 }
 0xb81   : > { %v1756_v58 = vmul.f32 %v2330_v38, %v1748_v52 }
 0xb83   : > { %v1763_v60 = vmul.f32 %v2059_v57, %v1756_v58 }
 0xb85   : > { %v1770_v61 = vadd.f32 %v2060_v59, %v1763_v60 }
 0xb87   : > { %1771 = vst.msk [vmem:[%s649_s5] sm:$0xff] %vm717_vm1, %v1770_v61 }
 0xb88 PF: > { %s2974_s15 = sld [smem:[#allocation11_spill]]  ;;  %s2975_s25 = sld [smem:[#allocation8_spill]] }
 0xb89   : > { %s2977_s30 = sld [smem:[#allocation27_spill]]  ;;  %s1786_s16 = sshll.u32 %s649_s5, 4  ;;  %s1787_s16 = int_to_ptr.vmem [resolvable:$true] %s1786_s16 }
 0xb8a   : > { %s2331_s21 = scalar_lea.vmem %s1787_s16, 128  ;;  %s2438_s28 = smov [#allocation4]  }
 0xb8b   : > { %p2332_p2 = scmp.ne.s32.totalorder %s1787_s16, %s2331_s21  ;;  %s2335_s4 = sshll.u32 %s2438_s28, 4  ;;  %s2336_s4 = int_to_ptr.vmem [resolvable:$false] %s2335_s4 }
 0xb8c   : > { %s2337_s29 = scalar_lea.vmem %s2336_s4, 256  ;;  %p2338_p6 = scmp.lt.s32.totalorder %s1787_s16, %s2336_s4 }
 0xb8d   : > { %p2333_p4 = pnand %p2332_p2, %p2568_p3  ;;  %p2339_p7 = scmp.lt.s32.totalorder %s2337_s29, %s2331_s21 }
 0xb8e   : > { %s2062_s20 = sshll.u32 %s2974_s15, 7  ;;  %s2978_s22 = sand.u32 1, %s2975_s25  }
 0xb8f   : > { %s2853_s27 = scalar_lea.hbm %s2977_s30, %s2062_s20  ;;  %s1773_s3 = scalar_lea.sflag [#allocation5], %s2978_s22 }
 0xb90   : > { %p2334_p5 = pneg %p2333_p4  ;;  %p2340_p8 = por %p2339_p7, %p2338_p6 }
 0xb92   : > { %p2341_p10 = pnand %p2340_p8, %p2334_p5 }
 0xb94   : > { %2344 = shalt.err (!%p2341_p10)
}
 0xb95   : > { %s2345_s23 = scalar_lea.hbm %s2853_s27, 128  ;;  %s2349_s0 = scalar_lea.hbm %s2977_s30, 256 }
 0xb96   : > { %p2346_p11 = scmp.ne.s32.totalorder %s2853_s27, %s2345_s23  ;;  %p2350_p0 = scmp.lt.u32.totalorder %s2853_s27, %s2977_s30 }
 0xb97   : > { %p2351_p1 = scmp.lt.u32.totalorder %s2349_s0, %s2345_s23  ;;  %p2353_p4 = scmp.lt.u32.totalorder %s2345_s23, %s2853_s27 }
 0xb98   : > { %p2347_p12 = pnand %p2346_p11, %p2568_p3 }
 0xb99   : > { %p2352_p2 = por %p2351_p1, %p2350_p0 }
 0xb9a   : > { %p2348_p13 = pneg %p2347_p12 }
 0xb9b   : > { %p2354_p5 = por %p2353_p4, %p2352_p2 }
 0xb9d   : > { %p2355_p6 = pnand %p2354_p5, %p2348_p13 }
 0xb9f   : > { %2358 = shalt.err (!%p2355_p6)
}
 0xba0   : > { %2175 = dma.vmem_to_hbm [thread:$0]  (%p2568_p3), %s1787_s16, 128, %s2853_s27, %s1773_s3  }
 0xba1 PF: > { %s2979_s24 = sld [smem:[#allocation14_spill]]  ;;  %s2980_s26 = sld [smem:[#allocation7_spill]] }
 0xba7   : > { %p2181_p7 = scmp.ge.s32.totalorder %s2979_s24, 2  ;;  %s1798_s25 = sand.u32 1, %s2980_s26  }
 0xba8   : > { %s1799_s20 = scalar_lea.sflag [#allocation5], %s1798_s25 }
 0xba9   : > { %p2178_p8 = pnand %p2181_p7, %p2578_p9 }
 0xbab   : > { %2392 = dma.done.wait (!%p2178_p8), %s1799_s20, 128  }
 0xbac   : > { %2394 = vsyncadd (!%p2178_p8), %s1799_s20, 4294967168  ;;  %s28_s25 = sadd.s32 1, %s2979_s24   ;;  %s2982_s18 = sld [smem:[#allocation8_spill]] }
 0xbad   : > { %p25_p10 = scmp.ge.s32.totalorder %s28_s25, 6   ;;  %s2983_s19 = sld [smem:[#allocation9_spill]] }
 0xbae   : > { %s2984_s20 = sld [smem:[#allocation19_spill]]  ;;  %s2985_s21 = sld [smem:[#allocation12_spill]] }
 0xbaf   : > { %s2986_s22 = sld [smem:[#allocation13_spill]]  ;;  %s2987_s23 = sld [smem:[#allocation15_spill]] }
 0xbb0   : > { %s2988_s24 = sld [smem:[#allocation17_spill]]  ;;  %27 = sbr.rel (!%p25_p10) target bundleno = 14 (0xe), region = 159 }
 0xbb7   :  { %1804 = vsyncpa [#allocation5], 1 }
 0xbb8   :  { %1806 = vsyncpa [#allocation5 + $0x1], 1 }

</bundles_post_ra>
